<compile_context>
chip_gen: v7x
topology: tpu7x:2x2x1
jax: 0.10.0
libtpu: 0.0.40
codegen_flags: <defaults>
</compile_context>

<pallas_src>
import functools
import math

import jax
import jax.numpy as jnp
from jax import lax
from jax.experimental import pallas as pl
from jax.experimental.pallas import tpu as pltpu


def _round_up(x, m):
    return ((x + m - 1) // m) * m


def _softmax_last(x):
    m = jnp.max(x, axis=-1, keepdims=True)
    e = jnp.exp(x - m)
    return e * pl.reciprocal(jnp.sum(e, axis=-1, keepdims=True), approx=True)


# ---------------------------------------------------------------------------
# Kernel: one grid step = (episode b, tile of TB queries)
# ---------------------------------------------------------------------------
def selective_attn_kernel(
    protos_ref,   # (1, L, D)  f32  incremental protos, row P is zero pad
    base_ref,     # (1, Pb, D) f32  base prototypes
    q_ref,        # (1, TB, D) f32  query features for this tile
    wqkv_ref,     # (D, 3D)  fused [Wq | Wk | Wv]^T   in mxu dtype
    wqv_ref,      # (D, 2D)  fused [Wq | Wv]^T        in mxu dtype
    wk_ref,       # (D, D)   Wk^T                      in mxu dtype
    wfc_ref,      # (D, D)   Wfc^T                     in mxu dtype
    bfc_ref, gamma_ref, beta_ref,      # (1, D)  f32
    out_ref,      # (1, TB, P_out) f32  lane-dense logits
    *,
    num_proto,        # P
    inv_attn_temp,    # 1/sqrt(d_k)
    logit_scale,      # args.temperature
    mxu_dtype,
):
    P = num_proto
    L = protos_ref.shape[1]           # P + 1
    TB = q_ref.shape[1]
    D = q_ref.shape[2]
    P_out = out_ref.shape[2]
    cdt = mxu_dtype

    def mm(a_c, b_c):                 # 2-D matmul on MXU, f32 accumulate
        return jnp.dot(a_c, b_c, preferred_element_type=jnp.float32)

    def mm_nt(a_c, b_c):              # (m,d) x (n,d) -> (m,n)
        return lax.dot_general(a_c, b_c, (((1,), (1,)), ((), ())),
                               preferred_element_type=jnp.float32)

    def bmm_nt(a_c, b_c):             # (TB,l,d),(TB,m,d) -> (TB,l,m)
        return jnp.einsum("bld,bmd->blm", a_c, b_c,
                          preferred_element_type=jnp.float32)

    def bmm(a_c, b_c):                # (TB,l,m),(TB,m,d) -> (TB,l,d)
        return jnp.einsum("blm,bmd->bld", a_c, b_c,
                          preferred_element_type=jnp.float32)

    protos = protos_ref[0]            # (L, D) f32, row P is zeros
    base = base_ref[0]                # (Pb, D) f32
    q = q_ref[0]                      # (TB, D) f32

    wqkv = wqkv_ref[...]
    wqv = wqv_ref[...]
    wk = wk_ref[...]
    wfc = wfc_ref[...]

    # hoisted input casts (no-ops on the f32 MXU path)
    p_c = protos.astype(cdt)
    q_c = q.astype(cdt)
    b_c = base.astype(cdt)

    # --- stage-1 projections on compact slabs (protos/base once per step) ---
    pqkv = mm(p_c, wqkv)              # (L, 3D)
    qqkv = mm(q_c, wqkv)              # (TB, 3D)
    bqkv = mm(b_c, wqkv)              # (Pb, 3D) (Wq columns unused, negligible)

    pq_c = pqkv[:, :D].astype(cdt)
    pk_c = pqkv[:, D:2 * D].astype(cdt)
    pv_c = pqkv[:, 2 * D:].astype(cdt)
    qq_c = qqkv[:, :D].astype(cdt)
    qk_c = qqkv[:, D:2 * D].astype(cdt)
    qv_c = qqkv[:, 2 * D:].astype(cdt)
    kb_c = bqkv[:, D:2 * D].astype(cdt)
    vb_c = bqkv[:, 2 * D:].astype(cdt)

    # row mask: rows < P are the shared protos, row P is the per-query feature
    row = lax.broadcasted_iota(jnp.int32, (L, D), 0)
    is_proto = (row < P)[None]                                # (1, L, D)

    def assemble(p_rows, q_rows):     # (L,D),(TB,D) -> (TB,L,D), no HBM traffic
        return jnp.where(is_proto, p_rows[None], q_rows[:, None, :])

    # --- self attention over combined = [protos ; query] ---
    qc = assemble(pq_c, qq_c)
    kc = assemble(pk_c, qk_c)
    vc = assemble(pv_c, qv_c)
    a_self = _softmax_last(bmm_nt(qc, kc) * inv_attn_temp)    # (TB, L, L)
    self_out = bmm(a_self.astype(cdt), vc)                    # (TB, L, D) f32

    # --- mutual attention: proto rows once per step, query rows per query ---
    a_mp = _softmax_last(mm_nt(pq_c, kb_c) * inv_attn_temp)   # (L, Pb), row P junk
    mut_p = mm(a_mp.astype(cdt), vb_c)                        # (L, D)
    a_mq = _softmax_last(mm_nt(qq_c, kb_c) * inv_attn_temp)   # (TB, Pb)
    mut_q = mm(a_mq.astype(cdt), vb_c)                        # (TB, D)

    # k_sel: (L,D)+(TB,D) projections instead of the (TB*L, D) slab
    ksel_p = mm(mut_p.astype(cdt), wk).astype(cdt)            # (L, D)
    ksel_q = mm(mut_q.astype(cdt), wk).astype(cdt)            # (TB, D)
    k_sel = assemble(ksel_p, ksel_q)                          # (TB, L, D)

    # --- selective attention: q,v from self stream (per-query), k from mutual ---
    self2_c = self_out.reshape(TB * L, D).astype(cdt)         # hoisted cast
    qv_sel = mm(self2_c, wqv)                                 # (TB*L, 2D)
    q_sel = qv_sel[:, :D].reshape(TB, L, D).astype(cdt)
    v_sel = qv_sel[:, D:].reshape(TB, L, D).astype(cdt)
    a_sel = _softmax_last(bmm_nt(q_sel, k_sel) * inv_attn_temp)   # (TB, L, L)
    sel_out = bmm(a_sel.astype(cdt), v_sel)                   # (TB, L, D) f32

    # --- fc_select + residual + LayerNorm (f32) ---
    combined_f32 = jnp.where(is_proto, protos[None], q[:, None, :])   # residual
    pre = (mm(sel_out.reshape(TB * L, D).astype(cdt), wfc)
           + bfc_ref[...] + combined_f32.reshape(TB * L, D))
    mean = jnp.mean(pre, axis=-1, keepdims=True)
    xc = pre - mean
    var = jnp.mean(xc * xc, axis=-1, keepdims=True)
    ln = xc * lax.rsqrt(var + 1e-5) * gamma_ref[...] + beta_ref[...]
    ln3 = ln.reshape(TB, L, D)

    # --- cosine similarity of the query row vs every row (VPU only) ---
    q_out = ln3[:, P:P + 1, :]                                # (TB, 1, D)
    num = jnp.sum(ln3 * q_out, axis=-1)                       # (TB, L)
    pn2 = jnp.sum(ln3 * ln3, axis=-1)                         # (TB, L)
    qn2 = jnp.sum(q_out * q_out, axis=-1)                     # (TB, 1)
    eps = 1e-8
    cos = num * lax.rsqrt(jnp.maximum(pn2 * qn2, eps * eps))  # (TB, L)
    logits = cos * logit_scale                                # cols >= P are junk

    # lane-dense store: pad L -> P_out lanes (sliced off in the wrapper)
    if P_out > L:
        logits = jnp.concatenate(
            [logits, jnp.zeros((TB, P_out - L), jnp.float32)], axis=-1)
    out_ref[0] = logits


# ---------------------------------------------------------------------------
# Wrapper: MYNET._forward glue + pallas_call
# ---------------------------------------------------------------------------
def mynet_forward(incr_support, query, base_support, params, *,
                  temperature=16.0, mxu_dtype=jnp.bfloat16, tb_max=64):
    """
    incr_support: (B, n_shot, P, D)
    query:        (B, q1, q2, D)
    base_support: (B, n_shot_b, Pb, D)
    returns:      (B * q1 * q2, P) logits
    """
    incr_proto = jnp.mean(incr_support, axis=1)          # (B, P, D)
    base_proto = jnp.mean(base_support, axis=1)          # (B, Pb, D)

    B, P, D = incr_proto.shape
    Pb = base_proto.shape[1]
    NQ = query.shape[1] * query.shape[2]
    L = P + 1

    q_feat = query.reshape(B, NQ, D).astype(jnp.float32)

    # pad proto stream with one zero row so the kernel only overwrites row P
    protos_pad = jnp.concatenate(
        [incr_proto, jnp.zeros((B, 1, D), incr_proto.dtype)],
        axis=1).astype(jnp.float32)

    # query-tile size: all queries at once if small, else a multiple of 8
    tb_max = max(8, (tb_max // 8) * 8)
    if NQ <= tb_max:
        TB, NQ_pad = NQ, NQ
    else:
        TB = tb_max
        NQ_pad = _round_up(NQ, TB)
        q_feat = jnp.concatenate(
            [q_feat, jnp.zeros((B, NQ_pad - NQ, D), jnp.float32)], axis=1)

    P_out = _round_up(L, 128)       # lane-dense output width
    n_tiles = NQ_pad // TB

    # fused weights (one MXU pass per input slab)
    wdt = mxu_dtype
    wq, wk, wv, wfc = params["wq_t"], params["wk_t"], params["wv_t"], params["wfc_t"]
    wqkv = jnp.concatenate([wq, wk, wv], axis=1).astype(wdt)    # (D, 3D)
    wqv = jnp.concatenate([wq, wv], axis=1).astype(wdt)         # (D, 2D)
    wk_c = wk.astype(wdt)
    wfc_c = wfc.astype(wdt)

    # advisory cost estimate for the XLA scheduler
    macs_per_step = (
        (L + TB + Pb) * D * 3 * D          # stage-1 fused QKV projections
        + 2 * TB * L * L * D               # self scores + self out
        + 2 * (L + TB) * Pb * D            # mutual scores + out
        + (L + TB) * D * D                 # k_sel projections
        + TB * L * 2 * D * D               # q_sel | v_sel fused projection
        + 2 * TB * L * L * D               # selective scores + out
        + TB * L * D * D                   # fc_select
    )
    n_steps = B * n_tiles
    w_itemsize = jnp.dtype(wdt).itemsize
    cost = pl.CostEstimate(
        flops=int(2 * macs_per_step * n_steps),
        transcendentals=int(n_steps * (2 * TB * L * L + (L + TB) * Pb + 2 * TB * L)),
        bytes_accessed=int(
            (wqkv.size + wqv.size + wk_c.size + wfc_c.size) * w_itemsize
            + (protos_pad.size + base_proto.size + q_feat.size) * 4
            + B * NQ_pad * P_out * 4 + 3 * D * 4),
    )

    kernel = functools.partial(
        selective_attn_kernel,
        num_proto=P,
        inv_attn_temp=1.0 / math.sqrt(float(D)),    # d_k = hdim = D
        logit_scale=float(temperature),
        mxu_dtype=mxu_dtype,
    )

    out = pl.pallas_call(
        kernel,
        out_shape=jax.ShapeDtypeStruct((B, NQ_pad, P_out), jnp.float32),
        grid_spec=pltpu.PrefetchScalarGridSpec(
            num_scalar_prefetch=0,
            grid=(B, n_tiles),
            in_specs=[
                pl.BlockSpec((1, L, D), lambda b, t: (b, 0, 0)),     # protos (padded)
                pl.BlockSpec((1, Pb, D), lambda b, t: (b, 0, 0)),    # base protos
                pl.BlockSpec((1, TB, D), lambda b, t: (b, t, 0)),    # query tile
                pl.BlockSpec((D, 3 * D), lambda b, t: (0, 0)),       # Wq|Wk|Wv ^T
                pl.BlockSpec((D, 2 * D), lambda b, t: (0, 0)),       # Wq|Wv ^T
                pl.BlockSpec((D, D), lambda b, t: (0, 0)),           # Wk^T
                pl.BlockSpec((D, D), lambda b, t: (0, 0)),           # Wfc^T
                pl.BlockSpec((1, D), lambda b, t: (0, 0)),           # fc bias
                pl.BlockSpec((1, D), lambda b, t: (0, 0)),           # LN gamma
                pl.BlockSpec((1, D), lambda b, t: (0, 0)),           # LN beta
            ],
            out_specs=pl.BlockSpec((1, TB, P_out), lambda b, t: (b, t, 0)),
        ),
        compiler_params=pltpu.CompilerParams(
            # both grid axes are fully independent -> shardable across the two
            # TensorCores on v7x; harmless on single-TC v5e/v6e
            dimension_semantics=("parallel", "parallel"),
            vmem_limit_bytes=48 * 1024 * 1024),
        cost_estimate=cost,
    )(
        protos_pad, base_proto.astype(jnp.float32), q_feat,
        wqkv, wqv, wk_c, wfc_c,
        params["bfc"], params["gamma"], params["beta"],
    )
    return out[:, :NQ, :P].reshape(B * NQ, P)


# ---------------------------------------------------------------------------
# Pure-JAX reference (mirrors the PyTorch module) for a correctness check
# ---------------------------------------------------------------------------
def mynet_forward_ref(incr_support, query, base_support, params, *, temperature=16.0):
    emb_dim = incr_support.shape[-1]
    incr_proto = jnp.mean(incr_support, axis=1)
    base_proto = jnp.mean(base_support, axis=1)
    B, P, _ = incr_proto.shape
    Pb = base_proto.shape[1]
    NQ = query.shape[1] * query.shape[2]
    q = query.reshape(-1, emb_dim)[:, None, :]
    incr_e = jnp.broadcast_to(incr_proto[:, None], (B, NQ, P, emb_dim)).reshape(B * NQ, P, emb_dim)
    base_e = jnp.broadcast_to(base_proto[:, None], (B, NQ, Pb, emb_dim)).reshape(B * NQ, Pb, emb_dim)
    combined = jnp.concatenate([incr_e, q], axis=1)            # (B*NQ, L, D)

    wq, wk, wv = params["wq_t"], params["wk_t"], params["wv_t"]
    wfc, bfc = params["wfc_t"], params["bfc"][0]
    gamma, beta = params["gamma"][0], params["beta"][0]
    inv_t = 1.0 / math.sqrt(float(emb_dim))

    def attn(qq, kk, vv):
        s = jnp.einsum("blk,bmk->blm", qq, kk) * inv_t
        return jnp.einsum("blm,bmd->bld", jax.nn.softmax(s, axis=-1), vv)

    self_out = attn(combined @ wq, combined @ wk, combined @ wv)
    mut_out = attn(combined @ wq, base_e @ wk, base_e @ wv)     # q_m = combined
    sel_out = attn(self_out @ wq, mut_out @ wk, self_out @ wv)
    pre = sel_out @ wfc + bfc + combined
    mean = jnp.mean(pre, axis=-1, keepdims=True)
    var = jnp.mean((pre - mean) ** 2, axis=-1, keepdims=True)
    ln = (pre - mean) / jnp.sqrt(var + 1e-5) * gamma + beta

    protos, qout = ln[:, :P, :], ln[:, P:, :]
    num = jnp.sum(protos * qout, axis=-1)
    den = jnp.linalg.norm(protos, axis=-1) * jnp.linalg.norm(qout, axis=-1)
    return num / jnp.maximum(den, 1e-8) * temperature


# ---------------------------------------------------------------------------
# Deterministic parameter construction (shapes from SelectiveAttention.__init__)
# ---------------------------------------------------------------------------
def make_params(key, d_model):
    d_k = d_v = d_model  # n_head = 1, hdim used for d_model, d_k, d_v
    k1, k2, k3, k4, k5 = jax.random.split(key, 5)
    std_qk = math.sqrt(2.0 / (d_model + d_k))
    std_v = math.sqrt(2.0 / (d_model + d_v))
    std_fc = math.sqrt(2.0 / (d_model + d_model))  # xavier_normal
    return {
        "wq_t": (jax.random.normal(k1, (d_model, d_k)) * std_qk).astype(jnp.float32),
        "wk_t": (jax.random.normal(k2, (d_model, d_k)) * std_qk).astype(jnp.float32),
        "wv_t": (jax.random.normal(k3, (d_model, d_v)) * std_v).astype(jnp.float32),
        "wfc_t": (jax.random.normal(k4, (d_v, d_model)) * std_fc).astype(jnp.float32),
        "bfc": (jax.random.uniform(k5, (1, d_model), minval=-1.0, maxval=1.0)
                / math.sqrt(d_model)).astype(jnp.float32),
        "gamma": jnp.ones((1, d_model), jnp.float32),
        "beta": jnp.zeros((1, d_model), jnp.float32),
    }


if __name__ == "__main__":
    key = jax.random.PRNGKey(0)
    kp, k_inc, k_qry, k_base = jax.random.split(key, 4)

    # Small shapes: emb_dim=128 (stands in for resnet18's 512-d features)
    D = 128
    num_batch, n_shot, P = 2, 5, 7          # 7 incremental prototypes -> L = 8
    q1, q2 = 1, 2                           # num_query = 2 per batch
    num_base = 11                           # base prototypes (independent of P)

    incr_support = jax.random.normal(k_inc, (num_batch, n_shot, P, D), jnp.float32)
    query = jax.random.normal(k_qry, (num_batch, q1, q2, D), jnp.float32)
    base_support = jax.random.normal(k_base, (num_batch, n_shot, num_base, D), jnp.float32)

    params = make_params(kp, D)

    ref = jax.block_until_ready(
        mynet_forward_ref(incr_support, query, base_support, params, temperature=16.0))

    # f32 MXU path: tight correctness check
    out_f32 = jax.block_until_ready(
        mynet_forward(incr_support, query, base_support, params,
                      temperature=16.0, mxu_dtype=jnp.float32))
    assert out_f32.shape == (num_batch * q1 * q2, P)
    assert jnp.allclose(out_f32, ref, atol=2e-2, rtol=2e-2), (
        f"f32 max abs err {jnp.max(jnp.abs(out_f32 - ref))}")

    # bf16 MXU path (default perf configuration): looser check
    out_bf16 = jax.block_until_ready(
        mynet_forward(incr_support, query, base_support, params,
                      temperature=16.0, mxu_dtype=jnp.bfloat16))
    assert out_bf16.shape == (num_batch * q1 * q2, P)
    assert jnp.allclose(out_bf16, ref, atol=2.5e-1, rtol=5e-2), (
        f"bf16 max abs err {jnp.max(jnp.abs(out_bf16 - ref))}")

    print("KERNEL_OK")
</pallas_src>

<mosaic_0001>
module attributes {stable_mosaic.version = 11 : i64} {
  func.func @selective_attn_kernel(%arg0: i32, %arg1: i32, %arg2: memref<1x8x128xf32, #tpu.memory_space<vmem>>, %arg3: memref<1x11x128xf32, #tpu.memory_space<vmem>>, %arg4: memref<1x2x128xf32, #tpu.memory_space<vmem>>, %arg5: memref<128x384xf32, #tpu.memory_space<vmem>>, %arg6: memref<128x256xf32, #tpu.memory_space<vmem>>, %arg7: memref<128x128xf32, #tpu.memory_space<vmem>>, %arg8: memref<128x128xf32, #tpu.memory_space<vmem>>, %arg9: memref<1x128xf32, #tpu.memory_space<vmem>>, %arg10: memref<1x128xf32, #tpu.memory_space<vmem>>, %arg11: memref<1x128xf32, #tpu.memory_space<vmem>>, %arg12: memref<1x2x128xf32, #tpu.memory_space<vmem>>) attributes {dimension_semantics = [#tpu.dimension_semantics<parallel>, #tpu.dimension_semantics<parallel>], iteration_bounds = array<i64: 2, 1>, scalar_prefetch = 0 : i64, scratch_operands = 0 : i64, tpu.core_type = #tpu.core_type<tc>, window_params = [{transform_indices = @transform_0, window_bounds = array<i64: 1, 8, 128>}, {transform_indices = @transform_1, window_bounds = array<i64: 1, 11, 128>}, {transform_indices = @transform_2, window_bounds = array<i64: 1, 2, 128>}, {pipeline_mode = #tpu.pipeline_mode<synchronous>, transform_indices = @transform_3, window_bounds = array<i64: 128, 384>}, {pipeline_mode = #tpu.pipeline_mode<synchronous>, transform_indices = @transform_4, window_bounds = array<i64: 128, 256>}, {pipeline_mode = #tpu.pipeline_mode<synchronous>, transform_indices = @transform_5, window_bounds = array<i64: 128, 128>}, {pipeline_mode = #tpu.pipeline_mode<synchronous>, transform_indices = @transform_6, window_bounds = array<i64: 128, 128>}, {pipeline_mode = #tpu.pipeline_mode<synchronous>, transform_indices = @transform_7, window_bounds = array<i64: 1, 128>}, {pipeline_mode = #tpu.pipeline_mode<synchronous>, transform_indices = @transform_8, window_bounds = array<i64: 1, 128>}, {pipeline_mode = #tpu.pipeline_mode<synchronous>, transform_indices = @transform_9, window_bounds = array<i64: 1, 128>}, {transform_indices = @transform_10, window_bounds = array<i64: 1, 2, 128>}]} {
    %c0 = arith.constant 0 : index
    %c0_0 = arith.constant 0 : index
    %c0_1 = arith.constant 0 : index
    %0 = vector.load %arg2[%c0, %c0_0, %c0_1] : memref<1x8x128xf32, #tpu.memory_space<vmem>>, vector<1x8x128xf32>
    %1 = vector.shape_cast %0 : vector<1x8x128xf32> to vector<8x128xf32>
    %c0_2 = arith.constant 0 : index
    %c0_3 = arith.constant 0 : index
    %c0_4 = arith.constant 0 : index
    %2 = vector.load %arg3[%c0_2, %c0_3, %c0_4] : memref<1x11x128xf32, #tpu.memory_space<vmem>>, vector<1x11x128xf32>
    %3 = vector.shape_cast %2 : vector<1x11x128xf32> to vector<11x128xf32>
    %c0_5 = arith.constant 0 : index
    %c0_6 = arith.constant 0 : index
    %c0_7 = arith.constant 0 : index
    %4 = vector.load %arg4[%c0_5, %c0_6, %c0_7] : memref<1x2x128xf32, #tpu.memory_space<vmem>>, vector<1x2x128xf32>
    %5 = vector.shape_cast %4 : vector<1x2x128xf32> to vector<2x128xf32>
    %c0_8 = arith.constant 0 : index
    %c0_9 = arith.constant 0 : index
    %6 = vector.load %arg5[%c0_8, %c0_9] : memref<128x384xf32, #tpu.memory_space<vmem>>, vector<128x384xf32>
    %c0_10 = arith.constant 0 : index
    %c0_11 = arith.constant 0 : index
    %7 = vector.load %arg6[%c0_10, %c0_11] : memref<128x256xf32, #tpu.memory_space<vmem>>, vector<128x256xf32>
    %c0_12 = arith.constant 0 : index
    %c0_13 = arith.constant 0 : index
    %8 = vector.load %arg7[%c0_12, %c0_13] : memref<128x128xf32, #tpu.memory_space<vmem>>, vector<128x128xf32>
    %c0_14 = arith.constant 0 : index
    %c0_15 = arith.constant 0 : index
    %9 = vector.load %arg8[%c0_14, %c0_15] : memref<128x128xf32, #tpu.memory_space<vmem>>, vector<128x128xf32>
    %cst = arith.constant dense<0.000000e+00> : vector<8x384xf32>
    %10 = tpu.matmul %1, %6, %cst {dimension_numbers = #tpu.dot_dimension_numbers<[1], [0], [0], [1], [0, 0, 1, 1], [], []>} : vector<8x128xf32>, vector<128x384xf32>, vector<8x384xf32> -> vector<8x384xf32>
    %cst_16 = arith.constant dense<0.000000e+00> : vector<2x384xf32>
    %11 = tpu.matmul %5, %6, %cst_16 {dimension_numbers = #tpu.dot_dimension_numbers<[1], [0], [0], [1], [0, 0, 1, 1], [], []>} : vector<2x128xf32>, vector<128x384xf32>, vector<2x384xf32> -> vector<2x384xf32>
    %cst_17 = arith.constant dense<0.000000e+00> : vector<11x384xf32>
    %12 = tpu.matmul %3, %6, %cst_17 {dimension_numbers = #tpu.dot_dimension_numbers<[1], [0], [0], [1], [0, 0, 1, 1], [], []>} : vector<11x128xf32>, vector<128x384xf32>, vector<11x384xf32> -> vector<11x384xf32>
    %13 = vector.extract_strided_slice %10 {offsets = [0, 0], sizes = [8, 128], strides = [1, 1]} : vector<8x384xf32> to vector<8x128xf32>
    %14 = vector.extract_strided_slice %10 {offsets = [0, 128], sizes = [8, 128], strides = [1, 1]} : vector<8x384xf32> to vector<8x128xf32>
    %15 = vector.extract_strided_slice %10 {offsets = [0, 256], sizes = [8, 128], strides = [1, 1]} : vector<8x384xf32> to vector<8x128xf32>
    %16 = vector.extract_strided_slice %11 {offsets = [0, 0], sizes = [2, 128], strides = [1, 1]} : vector<2x384xf32> to vector<2x128xf32>
    %17 = vector.extract_strided_slice %11 {offsets = [0, 128], sizes = [2, 128], strides = [1, 1]} : vector<2x384xf32> to vector<2x128xf32>
    %18 = vector.extract_strided_slice %11 {offsets = [0, 256], sizes = [2, 128], strides = [1, 1]} : vector<2x384xf32> to vector<2x128xf32>
    %19 = vector.extract_strided_slice %12 {offsets = [0, 128], sizes = [11, 128], strides = [1, 1]} : vector<11x384xf32> to vector<11x128xf32>
    %20 = vector.extract_strided_slice %12 {offsets = [0, 256], sizes = [11, 128], strides = [1, 1]} : vector<11x384xf32> to vector<11x128xf32>
    %21 = tpu.iota {dimensions = array<i32: 0>} : vector<8x128xi32>
    %c7_i32 = arith.constant 7 : i32
    %22 = vector.broadcast %c7_i32 : i32 to vector<8x128xi32>
    %23 = arith.cmpi slt, %21, %22 : vector<8x128xi32>
    %24 = vector.shape_cast %23 : vector<8x128xi1> to vector<1x8x128xi1>
    %25 = vector.shape_cast %13 : vector<8x128xf32> to vector<1x8x128xf32>
    %26 = vector.shape_cast %16 : vector<2x128xf32> to vector<2x1x128xf32>
    %27 = vector.shape_cast %24 : vector<1x8x128xi1> to vector<1x8x128xi1>
    %28 = vector.broadcast %27 : vector<1x8x128xi1> to vector<2x8x128xi1>
    %29 = vector.shape_cast %25 : vector<1x8x128xf32> to vector<1x8x128xf32>
    %30 = vector.broadcast %29 : vector<1x8x128xf32> to vector<2x8x128xf32>
    %31 = vector.shape_cast %26 : vector<2x1x128xf32> to vector<2x1x128xf32>
    %32 = vector.broadcast %31 : vector<2x1x128xf32> to vector<2x8x128xf32>
    %33 = arith.select %28, %30, %32 : vector<2x8x128xi1>, vector<2x8x128xf32>
    %34 = vector.shape_cast %14 : vector<8x128xf32> to vector<1x8x128xf32>
    %35 = vector.shape_cast %17 : vector<2x128xf32> to vector<2x1x128xf32>
    %36 = vector.shape_cast %24 : vector<1x8x128xi1> to vector<1x8x128xi1>
    %37 = vector.broadcast %36 : vector<1x8x128xi1> to vector<2x8x128xi1>
    %38 = vector.shape_cast %34 : vector<1x8x128xf32> to vector<1x8x128xf32>
    %39 = vector.broadcast %38 : vector<1x8x128xf32> to vector<2x8x128xf32>
    %40 = vector.shape_cast %35 : vector<2x1x128xf32> to vector<2x1x128xf32>
    %41 = vector.broadcast %40 : vector<2x1x128xf32> to vector<2x8x128xf32>
    %42 = arith.select %37, %39, %41 : vector<2x8x128xi1>, vector<2x8x128xf32>
    %43 = vector.shape_cast %15 : vector<8x128xf32> to vector<1x8x128xf32>
    %44 = vector.shape_cast %18 : vector<2x128xf32> to vector<2x1x128xf32>
    %45 = vector.shape_cast %24 : vector<1x8x128xi1> to vector<1x8x128xi1>
    %46 = vector.broadcast %45 : vector<1x8x128xi1> to vector<2x8x128xi1>
    %47 = vector.shape_cast %43 : vector<1x8x128xf32> to vector<1x8x128xf32>
    %48 = vector.broadcast %47 : vector<1x8x128xf32> to vector<2x8x128xf32>
    %49 = vector.shape_cast %44 : vector<2x1x128xf32> to vector<2x1x128xf32>
    %50 = vector.broadcast %49 : vector<2x1x128xf32> to vector<2x8x128xf32>
    %51 = arith.select %46, %48, %50 : vector<2x8x128xi1>, vector<2x8x128xf32>
    "tpu.trace_start"() <{level = 10 : i32, message = "bld,bmd->blm"}> : () -> ()
    %cst_18 = arith.constant dense<0.000000e+00> : vector<2x8x8xf32>
    %52 = tpu.matmul %33, %42, %cst_18 {dimension_numbers = #tpu.dot_dimension_numbers<[2], [2], [1], [1], [0, 0, 0, 1, 1, 1], [0], [0]>} : vector<2x8x128xf32>, vector<2x8x128xf32>, vector<2x8x8xf32> -> vector<2x8x8xf32>
    "tpu.trace_stop"() : () -> ()
    %cst_19 = arith.constant 0.0883883461 : f32
    %53 = vector.broadcast %cst_19 : f32 to vector<2x8x8xf32>
    %54 = arith.mulf %52, %53 : vector<2x8x8xf32>
    %cst_20 = arith.constant dense<0xFF800000> : vector<2x8xf32>
    %55 = vector.multi_reduction <maximumf>, %54, %cst_20 [2] : vector<2x8x8xf32> to vector<2x8xf32>
    %56 = vector.shape_cast %55 : vector<2x8xf32> to vector<2x8x1xf32>
    %57 = vector.broadcast %56 : vector<2x8x1xf32> to vector<2x8x8xf32>
    %58 = arith.subf %54, %57 : vector<2x8x8xf32>
    %59 = math.exp %58 : vector<2x8x8xf32>
    %cst_21 = arith.constant dense<0.000000e+00> : vector<2x8xf32>
    %60 = vector.multi_reduction <add>, %59, %cst_21 [2] : vector<2x8x8xf32> to vector<2x8xf32>
    %61 = vector.shape_cast %60 : vector<2x8xf32> to vector<2x8x1xf32>
    %62 = tpu.reciprocal %61 {approx = true} : vector<2x8x1xf32> -> vector<2x8x1xf32>
    %63 = vector.broadcast %62 : vector<2x8x1xf32> to vector<2x8x8xf32>
    %64 = arith.mulf %59, %63 : vector<2x8x8xf32>
    "tpu.trace_start"() <{level = 10 : i32, message = "blm,bmd->bld"}> : () -> ()
    %cst_22 = arith.constant dense<0.000000e+00> : vector<2x8x128xf32>
    %65 = tpu.matmul %64, %51, %cst_22 {dimension_numbers = #tpu.dot_dimension_numbers<[2], [1], [1], [2], [0, 0, 0, 1, 1, 2], [0], [0]>} : vector<2x8x8xf32>, vector<2x8x128xf32>, vector<2x8x128xf32> -> vector<2x8x128xf32>
    "tpu.trace_stop"() : () -> ()
    %cst_23 = arith.constant dense<0.000000e+00> : vector<8x11xf32>
    %66 = tpu.matmul %13, %19, %cst_23 {dimension_numbers = #tpu.dot_dimension_numbers<[1], [1], [0], [0], [0, 0, 1, 0], [], []>} : vector<8x128xf32>, vector<11x128xf32>, vector<8x11xf32> -> vector<8x11xf32>
    %cst_24 = arith.constant 0.0883883461 : f32
    %67 = vector.broadcast %cst_24 : f32 to vector<8x11xf32>
    %68 = arith.mulf %66, %67 : vector<8x11xf32>
    %cst_25 = arith.constant dense<0xFF800000> : vector<8xf32>
    %69 = vector.multi_reduction <maximumf>, %68, %cst_25 [1] : vector<8x11xf32> to vector<8xf32>
    %70 = vector.shape_cast %69 : vector<8xf32> to vector<8x1xf32>
    %71 = vector.broadcast %70 : vector<8x1xf32> to vector<8x11xf32>
    %72 = arith.subf %68, %71 : vector<8x11xf32>
    %73 = math.exp %72 : vector<8x11xf32>
    %cst_26 = arith.constant dense<0.000000e+00> : vector<8xf32>
    %74 = vector.multi_reduction <add>, %73, %cst_26 [1] : vector<8x11xf32> to vector<8xf32>
    %75 = vector.shape_cast %74 : vector<8xf32> to vector<8x1xf32>
    %76 = tpu.reciprocal %75 {approx = true} : vector<8x1xf32> -> vector<8x1xf32>
    %77 = vector.broadcast %76 : vector<8x1xf32> to vector<8x11xf32>
    %78 = arith.mulf %73, %77 : vector<8x11xf32>
    %cst_27 = arith.constant dense<0.000000e+00> : vector<8x128xf32>
    %79 = tpu.matmul %78, %20, %cst_27 {dimension_numbers = #tpu.dot_dimension_numbers<[1], [0], [0], [1], [0, 0, 1, 1], [], []>} : vector<8x11xf32>, vector<11x128xf32>, vector<8x128xf32> -> vector<8x128xf32>
    %cst_28 = arith.constant dense<0.000000e+00> : vector<2x11xf32>
    %80 = tpu.matmul %16, %19, %cst_28 {dimension_numbers = #tpu.dot_dimension_numbers<[1], [1], [0], [0], [0, 0, 1, 0], [], []>} : vector<2x128xf32>, vector<11x128xf32>, vector<2x11xf32> -> vector<2x11xf32>
    %cst_29 = arith.constant 0.0883883461 : f32
    %81 = vector.broadcast %cst_29 : f32 to vector<2x11xf32>
    %82 = arith.mulf %80, %81 : vector<2x11xf32>
    %cst_30 = arith.constant dense<0xFF800000> : vector<2xf32>
    %83 = vector.multi_reduction <maximumf>, %82, %cst_30 [1] : vector<2x11xf32> to vector<2xf32>
    %84 = vector.shape_cast %83 : vector<2xf32> to vector<2x1xf32>
    %85 = vector.broadcast %84 : vector<2x1xf32> to vector<2x11xf32>
    %86 = arith.subf %82, %85 : vector<2x11xf32>
    %87 = math.exp %86 : vector<2x11xf32>
    %cst_31 = arith.constant dense<0.000000e+00> : vector<2xf32>
    %88 = vector.multi_reduction <add>, %87, %cst_31 [1] : vector<2x11xf32> to vector<2xf32>
    %89 = vector.shape_cast %88 : vector<2xf32> to vector<2x1xf32>
    %90 = tpu.reciprocal %89 {approx = true} : vector<2x1xf32> -> vector<2x1xf32>
    %91 = vector.broadcast %90 : vector<2x1xf32> to vector<2x11xf32>
    %92 = arith.mulf %87, %91 : vector<2x11xf32>
    %cst_32 = arith.constant dense<0.000000e+00> : vector<2x128xf32>
    %93 = tpu.matmul %92, %20, %cst_32 {dimension_numbers = #tpu.dot_dimension_numbers<[1], [0], [0], [1], [0, 0, 1, 1], [], []>} : vector<2x11xf32>, vector<11x128xf32>, vector<2x128xf32> -> vector<2x128xf32>
    %cst_33 = arith.constant dense<0.000000e+00> : vector<8x128xf32>
    %94 = tpu.matmul %79, %8, %cst_33 {dimension_numbers = #tpu.dot_dimension_numbers<[1], [0], [0], [1], [0, 0, 1, 1], [], []>} : vector<8x128xf32>, vector<128x128xf32>, vector<8x128xf32> -> vector<8x128xf32>
    %cst_34 = arith.constant dense<0.000000e+00> : vector<2x128xf32>
    %95 = tpu.matmul %93, %8, %cst_34 {dimension_numbers = #tpu.dot_dimension_numbers<[1], [0], [0], [1], [0, 0, 1, 1], [], []>} : vector<2x128xf32>, vector<128x128xf32>, vector<2x128xf32> -> vector<2x128xf32>
    %96 = vector.shape_cast %94 : vector<8x128xf32> to vector<1x8x128xf32>
    %97 = vector.shape_cast %95 : vector<2x128xf32> to vector<2x1x128xf32>
    %98 = vector.shape_cast %24 : vector<1x8x128xi1> to vector<1x8x128xi1>
    %99 = vector.broadcast %98 : vector<1x8x128xi1> to vector<2x8x128xi1>
    %100 = vector.shape_cast %96 : vector<1x8x128xf32> to vector<1x8x128xf32>
    %101 = vector.broadcast %100 : vector<1x8x128xf32> to vector<2x8x128xf32>
    %102 = vector.shape_cast %97 : vector<2x1x128xf32> to vector<2x1x128xf32>
    %103 = vector.broadcast %102 : vector<2x1x128xf32> to vector<2x8x128xf32>
    %104 = arith.select %99, %101, %103 : vector<2x8x128xi1>, vector<2x8x128xf32>
    %105 = vector.shape_cast %65 : vector<2x8x128xf32> to vector<16x128xf32>
    %cst_35 = arith.constant dense<0.000000e+00> : vector<16x256xf32>
    %106 = tpu.matmul %105, %7, %cst_35 {dimension_numbers = #tpu.dot_dimension_numbers<[1], [0], [0], [1], [0, 0, 1, 1], [], []>} : vector<16x128xf32>, vector<128x256xf32>, vector<16x256xf32> -> vector<16x256xf32>
    %107 = vector.extract_strided_slice %106 {offsets = [0, 0], sizes = [16, 128], strides = [1, 1]} : vector<16x256xf32> to vector<16x128xf32>
    %108 = vector.shape_cast %107 : vector<16x128xf32> to vector<2x8x128xf32>
    %109 = vector.extract_strided_slice %106 {offsets = [0, 128], sizes = [16, 128], strides = [1, 1]} : vector<16x256xf32> to vector<16x128xf32>
    %110 = vector.shape_cast %109 : vector<16x128xf32> to vector<2x8x128xf32>
    "tpu.trace_start"() <{level = 10 : i32, message = "bld,bmd->blm"}> : () -> ()
    %cst_36 = arith.constant dense<0.000000e+00> : vector<2x8x8xf32>
    %111 = tpu.matmul %108, %104, %cst_36 {dimension_numbers = #tpu.dot_dimension_numbers<[2], [2], [1], [1], [0, 0, 0, 1, 1, 1], [0], [0]>} : vector<2x8x128xf32>, vector<2x8x128xf32>, vector<2x8x8xf32> -> vector<2x8x8xf32>
    "tpu.trace_stop"() : () -> ()
    %cst_37 = arith.constant 0.0883883461 : f32
    %112 = vector.broadcast %cst_37 : f32 to vector<2x8x8xf32>
    %113 = arith.mulf %111, %112 : vector<2x8x8xf32>
    %cst_38 = arith.constant dense<0xFF800000> : vector<2x8xf32>
    %114 = vector.multi_reduction <maximumf>, %113, %cst_38 [2] : vector<2x8x8xf32> to vector<2x8xf32>
    %115 = vector.shape_cast %114 : vector<2x8xf32> to vector<2x8x1xf32>
    %116 = vector.broadcast %115 : vector<2x8x1xf32> to vector<2x8x8xf32>
    %117 = arith.subf %113, %116 : vector<2x8x8xf32>
    %118 = math.exp %117 : vector<2x8x8xf32>
    %cst_39 = arith.constant dense<0.000000e+00> : vector<2x8xf32>
    %119 = vector.multi_reduction <add>, %118, %cst_39 [2] : vector<2x8x8xf32> to vector<2x8xf32>
    %120 = vector.shape_cast %119 : vector<2x8xf32> to vector<2x8x1xf32>
    %121 = tpu.reciprocal %120 {approx = true} : vector<2x8x1xf32> -> vector<2x8x1xf32>
    %122 = vector.broadcast %121 : vector<2x8x1xf32> to vector<2x8x8xf32>
    %123 = arith.mulf %118, %122 : vector<2x8x8xf32>
    "tpu.trace_start"() <{level = 10 : i32, message = "blm,bmd->bld"}> : () -> ()
    %cst_40 = arith.constant dense<0.000000e+00> : vector<2x8x128xf32>
    %124 = tpu.matmul %123, %110, %cst_40 {dimension_numbers = #tpu.dot_dimension_numbers<[2], [1], [1], [2], [0, 0, 0, 1, 1, 2], [0], [0]>} : vector<2x8x8xf32>, vector<2x8x128xf32>, vector<2x8x128xf32> -> vector<2x8x128xf32>
    "tpu.trace_stop"() : () -> ()
    %125 = vector.shape_cast %1 : vector<8x128xf32> to vector<1x8x128xf32>
    %126 = vector.shape_cast %5 : vector<2x128xf32> to vector<2x1x128xf32>
    %127 = vector.shape_cast %24 : vector<1x8x128xi1> to vector<1x8x128xi1>
    %128 = vector.broadcast %127 : vector<1x8x128xi1> to vector<2x8x128xi1>
    %129 = vector.shape_cast %125 : vector<1x8x128xf32> to vector<1x8x128xf32>
    %130 = vector.broadcast %129 : vector<1x8x128xf32> to vector<2x8x128xf32>
    %131 = vector.shape_cast %126 : vector<2x1x128xf32> to vector<2x1x128xf32>
    %132 = vector.broadcast %131 : vector<2x1x128xf32> to vector<2x8x128xf32>
    %133 = arith.select %128, %130, %132 : vector<2x8x128xi1>, vector<2x8x128xf32>
    %134 = vector.shape_cast %124 : vector<2x8x128xf32> to vector<16x128xf32>
    %cst_41 = arith.constant dense<0.000000e+00> : vector<16x128xf32>
    %135 = tpu.matmul %134, %9, %cst_41 {dimension_numbers = #tpu.dot_dimension_numbers<[1], [0], [0], [1], [0, 0, 1, 1], [], []>} : vector<16x128xf32>, vector<128x128xf32>, vector<16x128xf32> -> vector<16x128xf32>
    %c0_42 = arith.constant 0 : index
    %c0_43 = arith.constant 0 : index
    %136 = vector.load %arg9[%c0_42, %c0_43] : memref<1x128xf32, #tpu.memory_space<vmem>>, vector<1x128xf32>
    %137 = vector.broadcast %136 : vector<1x128xf32> to vector<16x128xf32>
    %138 = arith.addf %135, %137 : vector<16x128xf32>
    %139 = vector.shape_cast %133 : vector<2x8x128xf32> to vector<16x128xf32>
    %140 = arith.addf %138, %139 : vector<16x128xf32>
    %cst_44 = arith.constant dense<0.000000e+00> : vector<16xf32>
    %141 = vector.multi_reduction <add>, %140, %cst_44 [1] : vector<16x128xf32> to vector<16xf32>
    %142 = vector.shape_cast %141 : vector<16xf32> to vector<16x1xf32>
    %cst_45 = arith.constant 1.280000e+02 : f32
    %143 = vector.broadcast %cst_45 : f32 to vector<16x1xf32>
    %144 = arith.divf %142, %143 : vector<16x1xf32>
    %145 = vector.broadcast %144 : vector<16x1xf32> to vector<16x128xf32>
    %146 = arith.subf %140, %145 : vector<16x128xf32>
    %147 = arith.mulf %146, %146 : vector<16x128xf32>
    %cst_46 = arith.constant dense<0.000000e+00> : vector<16xf32>
    %148 = vector.multi_reduction <add>, %147, %cst_46 [1] : vector<16x128xf32> to vector<16xf32>
    %149 = vector.shape_cast %148 : vector<16xf32> to vector<16x1xf32>
    %cst_47 = arith.constant 1.280000e+02 : f32
    %150 = vector.broadcast %cst_47 : f32 to vector<16x1xf32>
    %151 = arith.divf %149, %150 : vector<16x1xf32>
    %cst_48 = arith.constant 9.99999974E-6 : f32
    %152 = vector.broadcast %cst_48 : f32 to vector<16x1xf32>
    %153 = arith.addf %151, %152 : vector<16x1xf32>
    %154 = math.rsqrt %153 : vector<16x1xf32>
    %155 = vector.broadcast %154 : vector<16x1xf32> to vector<16x128xf32>
    %156 = arith.mulf %146, %155 : vector<16x128xf32>
    %c0_49 = arith.constant 0 : index
    %c0_50 = arith.constant 0 : index
    %157 = vector.load %arg10[%c0_49, %c0_50] : memref<1x128xf32, #tpu.memory_space<vmem>>, vector<1x128xf32>
    %158 = vector.broadcast %157 : vector<1x128xf32> to vector<16x128xf32>
    %159 = arith.mulf %156, %158 : vector<16x128xf32>
    %c0_51 = arith.constant 0 : index
    %c0_52 = arith.constant 0 : index
    %160 = vector.load %arg11[%c0_51, %c0_52] : memref<1x128xf32, #tpu.memory_space<vmem>>, vector<1x128xf32>
    %161 = vector.broadcast %160 : vector<1x128xf32> to vector<16x128xf32>
    %162 = arith.addf %159, %161 : vector<16x128xf32>
    %163 = vector.shape_cast %162 : vector<16x128xf32> to vector<2x8x128xf32>
    %164 = vector.extract_strided_slice %163 {offsets = [0, 7, 0], sizes = [2, 1, 128], strides = [1, 1, 1]} : vector<2x8x128xf32> to vector<2x1x128xf32>
    %165 = vector.broadcast %164 : vector<2x1x128xf32> to vector<2x8x128xf32>
    %166 = arith.mulf %163, %165 : vector<2x8x128xf32>
    %cst_53 = arith.constant dense<0.000000e+00> : vector<2x8xf32>
    %167 = vector.multi_reduction <add>, %166, %cst_53 [2] : vector<2x8x128xf32> to vector<2x8xf32>
    %168 = arith.mulf %163, %163 : vector<2x8x128xf32>
    %cst_54 = arith.constant dense<0.000000e+00> : vector<2x8xf32>
    %169 = vector.multi_reduction <add>, %168, %cst_54 [2] : vector<2x8x128xf32> to vector<2x8xf32>
    %170 = arith.mulf %164, %164 : vector<2x1x128xf32>
    %cst_55 = arith.constant dense<0.000000e+00> : vector<2x1xf32>
    %171 = vector.multi_reduction <add>, %170, %cst_55 [2] : vector<2x1x128xf32> to vector<2x1xf32>
    %172 = vector.broadcast %171 : vector<2x1xf32> to vector<2x8xf32>
    %173 = arith.mulf %169, %172 : vector<2x8xf32>
    %cst_56 = arith.constant 1.000000e-16 : f32
    %174 = vector.broadcast %cst_56 : f32 to vector<2x8xf32>
    %175 = arith.maximumf %173, %174 : vector<2x8xf32>
    %176 = math.rsqrt %175 : vector<2x8xf32>
    %177 = arith.mulf %167, %176 : vector<2x8xf32>
    %cst_57 = arith.constant 1.600000e+01 : f32
    %178 = vector.broadcast %cst_57 : f32 to vector<2x8xf32>
    %179 = arith.mulf %177, %178 : vector<2x8xf32>
    %cst_58 = arith.constant 0.000000e+00 : f32
    %180 = vector.broadcast %cst_58 : f32 to vector<2x120xf32>
    %181 = tpu.concatenate %179, %180 in 1 : vector<2x8xf32>, vector<2x120xf32> -> vector<2x128xf32>
    %c0_59 = arith.constant 0 : index
    %c0_60 = arith.constant 0 : index
    %c0_61 = arith.constant 0 : index
    %182 = vector.load %arg12[%c0_59, %c0_60, %c0_61] : memref<1x2x128xf32, #tpu.memory_space<vmem>>, vector<1x2x128xf32>
    %183 = vector.shape_cast %182 : vector<1x2x128xf32> to vector<2x128xf32>
    %184 = vector.shape_cast %181 : vector<2x128xf32> to vector<1x2x128xf32>
    tpu.vector_store %arg12[%c0_59, %c0_60, %c0_61], %184 {strides = array<i32>} : memref<1x2x128xf32, #tpu.memory_space<vmem>>, vector<1x2x128xf32>,
    return
  }
  func.func @transform_0(%arg0: i32, %arg1: i32) -> (i32, i32, i32) {
    %c0_i32 = arith.constant 0 : i32
    %c0_i32_0 = arith.constant 0 : i32
    %c0_i32_1 = arith.constant 0 : i32
    return %arg0, %c0_i32, %c0_i32_0 : i32, i32, i32
  }
  func.func @transform_1(%arg0: i32, %arg1: i32) -> (i32, i32, i32) {
    %c0_i32 = arith.constant 0 : i32
    %c0_i32_0 = arith.constant 0 : i32
    %c0_i32_1 = arith.constant 0 : i32
    return %arg0, %c0_i32, %c0_i32_0 : i32, i32, i32
  }
  func.func @transform_2(%arg0: i32, %arg1: i32) -> (i32, i32, i32) {
    %c0_i32 = arith.constant 0 : i32
    %c0_i32_0 = arith.constant 0 : i32
    return %arg0, %arg1, %c0_i32 : i32, i32, i32
  }
  func.func @transform_3(%arg0: i32, %arg1: i32) -> (i32, i32) {
    %c0_i32 = arith.constant 0 : i32
    %c0_i32_0 = arith.constant 0 : i32
    %c0_i32_1 = arith.constant 0 : i32
    return %c0_i32, %c0_i32_0 : i32, i32
  }
  func.func @transform_4(%arg0: i32, %arg1: i32) -> (i32, i32) {
    %c0_i32 = arith.constant 0 : i32
    %c0_i32_0 = arith.constant 0 : i32
    %c0_i32_1 = arith.constant 0 : i32
    return %c0_i32, %c0_i32_0 : i32, i32
  }
  func.func @transform_5(%arg0: i32, %arg1: i32) -> (i32, i32) {
    %c0_i32 = arith.constant 0 : i32
    %c0_i32_0 = arith.constant 0 : i32
    %c0_i32_1 = arith.constant 0 : i32
    return %c0_i32, %c0_i32_0 : i32, i32
  }
  func.func @transform_6(%arg0: i32, %arg1: i32) -> (i32, i32) {
    %c0_i32 = arith.constant 0 : i32
    %c0_i32_0 = arith.constant 0 : i32
    %c0_i32_1 = arith.constant 0 : i32
    return %c0_i32, %c0_i32_0 : i32, i32
  }
  func.func @transform_7(%arg0: i32, %arg1: i32) -> (i32, i32) {
    %c0_i32 = arith.constant 0 : i32
    %c0_i32_0 = arith.constant 0 : i32
    %c0_i32_1 = arith.constant 0 : i32
    return %c0_i32, %c0_i32_0 : i32, i32
  }
  func.func @transform_8(%arg0: i32, %arg1: i32) -> (i32, i32) {
    %c0_i32 = arith.constant 0 : i32
    %c0_i32_0 = arith.constant 0 : i32
    %c0_i32_1 = arith.constant 0 : i32
    return %c0_i32, %c0_i32_0 : i32, i32
  }
  func.func @transform_9(%arg0: i32, %arg1: i32) -> (i32, i32) {
    %c0_i32 = arith.constant 0 : i32
    %c0_i32_0 = arith.constant 0 : i32
    %c0_i32_1 = arith.constant 0 : i32
    return %c0_i32, %c0_i32_0 : i32, i32
  }
  func.func @transform_10(%arg0: i32, %arg1: i32) -> (i32, i32, i32) {
    %c0_i32 = arith.constant 0 : i32
    %c0_i32_0 = arith.constant 0 : i32
    return %arg0, %arg1, %c0_i32 : i32, i32, i32
  }
}

</mosaic_0001>

<bundles_post_ra>
// kernel: tpu_custom_call.1
= control target key start
LH: loop header
LB: loop body
LE: loop exit
PB: predicated region body
PF: predicated region fallthrough
CT: control target
= control target key end

     0   :  { %s4423_s0 = inlined_call_operand.vmem [shape: f32[2,8,128], index: 0, kind: input, shape index: {}]   ;;  %s4424_s1 = inlined_call_operand.vmem [shape: f32[2,11,128], index: 1, kind: input, shape index: {}]   ;;  %s4425_s2 = inlined_call_operand.vmem [shape: f32[2,2,128], index: 2, kind: input, shape index: {}]   ;;  %s4426_s3 = inlined_call_operand.hbm [shape: f32[128,384], index: 3, kind: input, shape index: {}]   ;;  %s4427_s4 = inlined_call_operand.hbm [shape: f32[128,256], index: 4, kind: input, shape index: {}]   ;;  %s4428_s5 = inlined_call_operand.hbm [shape: f32[128,128], index: 5, kind: input, shape index: {}]   ;;  %s4429_s6 = inlined_call_operand.hbm [shape: f32[128,128], index: 6, kind: input, shape index: {}]   ;;  %s4430_s7 = inlined_call_operand.vmem [shape: f32[1,128], index: 7, kind: input, shape index: {}]   ;;  %s4431_s8 = inlined_call_operand.vmem [shape: f32[1,128], index: 8, kind: input, shape index: {}]   ;;  %s4432_s9 = inlined_call_operand.vmem [shape: f32[1,128], index: 9, kind: input, shape index: {}]   ;;  %s4433_s10 = inlined_call_operand.hbm [shape: f32[2,2,128], index: 10, kind: output, shape index: {}]  }
   0x1   :  { %4445 = sst [smem:[#allocation22_spill]] %s4427_s4 }
   0x2   :  { %15 = vsyncpa [#allocation3], 0 }
   0x3   :  { %16 = vsyncpa [#allocation6], 0 }
   0x4   :  { %17 = vsyncpa [#allocation9], 0 }
   0x5   :  { %18 = vsyncpa [#allocation4], 0 }
   0x6   :  { %20 = vsyncpa [#allocation4 + $0x1], 0  ;;  %s3856_s13 = smov 0   ;;  %s3858_s14 = smov 0  }
   0x7   :  { %s3860_s15 = smov 0   ;;  %s3862_s16 = smov 0  }
   0x8   :  { %s3864_s17 = smov 0   ;;  %s3866_s18 = smov 0  }
   0x9 LB: > { %4446 = sst [smem:[#allocation15_spill]] %s3763_s13  ;;  %s2696_s19 = sadd.s32 4294967295, %s3783_s18   ;;  %s3783_s18 = sphi %s3866_s18, %s26_s18   ;;  %s3779_s17 = sphi %s3864_s17, %s4475_s17   ;;  %s3775_s16 = sphi %s3862_s16, %s4471_s16   ;;  %s3771_s15 = sphi %s3860_s15, %s4470_s15   ;;  %s3767_s14 = sphi %s3858_s14, %s4474_s14   ;;  %s3763_s13 = sphi %s3856_s13, %s4473_s13  }
   0xa   : > { %4447 = sst [smem:[#allocation16_spill]] %s3771_s15  ;;  %s2697_s20 = sadd.s32 4294967294, %s3783_s18  }
   0xb   : > { %4448 = sst [smem:[#allocation17_spill]] %s3779_s17  ;;  %s38_s21 = sadd.s32 1, %s3779_s17 }
   0xc   : > { %4449 = sst [smem:[#allocation18_spill]] %s3783_s18  ;;  %s274_s22 = sadd.s32 1, %s3771_s15 }
   0xd   : > { %p40_p0 = scmp.ge.s32.totalorder %s38_s21, 2  ;;  %p284_p1 = scmp.ne.s32.totalorder %s3771_s15, %s3767_s14 }
   0xe   : > { %p285_p2 = scmp.eq.s32.totalorder %s2696_s19, 1  ;;  %p290_p3 = scmp.ne.s32.totalorder %s3767_s14, %s3763_s13 }
   0xf   : > { %s4477_s21 = smov (%p40_p0, %s38_s21), 0  ;;  %p291_p5 = scmp.eq.s32.totalorder %s2697_s20, 1 }
  0x10   : > { %4450 = sst [smem:[#allocation19_spill]] %s4477_s21  ;;  %p3896_p4 = por %p285_p2, %p284_p1 }
  0x11   : > { %s269_s24 = ssub.s32 %s3779_s17, %s4477_s21  ;;  %p2698_p6 = scmp.ge.s32.totalorder %s3783_s18, 1 }
  0x12   : > { %s4451_s23 = scalar_select %p3896_p4, 1, 0 }
  0x13   : > { %p272_p7 = scmp.eq.s32.totalorder %s269_s24, 0  ;;  %p3903_p8 = por %p291_p5, %p290_p3 }
  0x14   : > { %p298_p9 = scmp.lt.s32.totalorder %s3783_s18, 3  ;;  %p3915_p11 = scmp.eq.s32.totalorder %s2696_s19, 0 }
  0x15   : > { %s4452_s25 = scalar_select %p3903_p8, 1, 0 }
  0x16   : > { %s3909_s26 = scalar_select %p272_p7, %s3771_s15, %s274_s22  }
  0x17   : > { %4453 = sst [smem:[#allocation20_spill]] %s4452_s25  ;;  %p3911_p10 = pnand %p2698_p6, %p298_p9 }
  0x18   : > { %4454 = sst [smem:[#allocation21_spill]] %s3909_s26  ;;  %s3785_s29 = smov [#allocation5]  }
  0x19   : > { %s4455_s27 = scalar_select %p3911_p10, 1, 0 }
  0x1a   : > { %s4456_s28 = scalar_select %p3915_p11, 1, 0 }
  0x1b   : > { %p3460_p12 = pneg %p3911_p10  ;;  %s323_s30 = sshll.u32 %s3785_s29, 4  ;;  %s324_s30 = int_to_ptr.vmem [resolvable:$true] %s323_s30 }
  0x1c   : > { %s3786_s12 = smov [#allocation2]   ;;  %s4458_s4 = sld [smem:[#allocation22_spill]] }
  0x1d   : > { %p3923_p13 = pnand %p3915_p11, %p3460_p12  ;;  %s310_s20 = sshll.u32 %s3786_s12, 4  ;;  %s311_s20 = int_to_ptr.vmem [resolvable:$true] %s310_s20 }
  0x1f   : > { %p3935_p1 = pneg %p3923_p13 }
  0x22   : > { %s3581_s19 = scalar_lea.hbm %s4458_s4, 4096 }
  0x23   : > { %p3582_p0 = scmp.ne.s32.totalorder %s4458_s4, %s3581_s19  ;;  %p3588_p5 = scmp.lt.u32.totalorder %s3581_s19, %s4458_s4 }
  0x25   : > { %p3584_p2 = pnand %p3935_p1, %p3582_p0 }
  0x27   : > { %p3585_p3 = pneg %p3584_p2 }
  0x29   : > { %p3590_p6 = pnand %p3588_p5, %p3585_p3 }
  0x2b   : > { %3593 = shalt.err (!%p3590_p6)
}
  0x2c   : > { %s3594_s12 = scalar_lea.vmem %s324_s30, 4096  ;;  %p3602_p8 = scmp.lt.s32.totalorder %s324_s30, %s324_s30 }
  0x2d   : > { %p3595_p7 = scmp.ne.s32.totalorder %s324_s30, %s3594_s12  ;;  %p3603_p4 = scmp.lt.s32.totalorder %s3594_s12, %s3594_s12 }
  0x2f   : > { %p3597_p9 = pnand %p3595_p7, %p3935_p1  ;;  %p3604_p11 = por %p3603_p4, %p3602_p8 }
  0x31   : > { %p3598_p12 = pneg %p3597_p9 }
  0x33   : > { %p3605_p10 = pnand %p3604_p11, %p3598_p12 }
  0x35   : > { %3608 = shalt.err (!%p3605_p10)
}
  0x36   : > { %s3787_s17 = smov 256   ;;  %s3788_s21 = smov 16  }
  0x37   : > { %3466 = dma.hbm_to_vmem [thread:$0]  (!%p3923_p13), %s4458_s4, 4096, %s324_s30, [#allocation6], %s3787_s17, %s3787_s17, %s3788_s21  }
  0x38   : > { %s3609_s19 = scalar_lea.hbm %s4426_s3, 6144 }
  0x39   : > { %p3610_p4 = scmp.ne.s32.totalorder %s4426_s3, %s3609_s19  ;;  %p3616_p11 = scmp.lt.u32.totalorder %s3609_s19, %s4426_s3 }
  0x3b   : > { %p3612_p8 = pnand %p3610_p4, %p3935_p1 }
  0x3d   : > { %p3613_p10 = pneg %p3612_p8 }
  0x3f   : > { %p3618_p0 = pnand %p3616_p11, %p3613_p10 }
  0x41   : > { %3621 = shalt.err (!%p3618_p0)
}
  0x42   : > { %s3622_s15 = scalar_lea.vmem %s311_s20, 6144  ;;  %p3630_p6 = scmp.lt.s32.totalorder %s311_s20, %s311_s20 }
  0x43   : > { %p3623_p2 = scmp.ne.s32.totalorder %s311_s20, %s3622_s15  ;;  %p3631_p7 = scmp.lt.s32.totalorder %s3622_s15, %s3622_s15 }
  0x45   : > { %p3625_p3 = pnand %p3623_p2, %p3935_p1  ;;  %p3632_p9 = por %p3631_p7, %p3630_p6 }
  0x47   : > { %p3626_p5 = pneg %p3625_p3 }
  0x49   : > { %p3633_p12 = pnand %p3632_p9, %p3626_p5 }
  0x4b   : > { %3636 = shalt.err (!%p3633_p12)
}
  0x4c   : > { %s3789_s13 = smov 384   ;;  %s3790_s25 = smov 24  }
  0x4d   : > { %3463 = dma.hbm_to_vmem [thread:$0]  (!%p3923_p13), %s4426_s3, 6144, %s311_s20, [#allocation3], %s3789_s13, %s3789_s13, %s3790_s25  }
  0x4e   : > { %s3791_s17 = smov [#allocation7]   ;;  %s3637_s24 = scalar_lea.hbm %s4428_s5, 2048 }
  0x4f   : > { %s336_s21 = sshll.u32 %s3791_s17, 4  ;;  %p3638_p4 = scmp.ne.s32.totalorder %s4428_s5, %s3637_s24  ;;  %s337_s21 = int_to_ptr.vmem [resolvable:$true] %s336_s21 }
  0x50   : > { %p3644_p11 = scmp.lt.u32.totalorder %s3637_s24, %s4428_s5 }
  0x51   : > { %p3640_p8 = pnand %p3638_p4, %p3935_p1 }
  0x53   : > { %p3641_p10 = pneg %p3640_p8 }
  0x55   : > { %p3646_p0 = pnand %p3644_p11, %p3641_p10 }
  0x57   : > { %3649 = shalt.err (!%p3646_p0)
}
  0x58   : > { %s3650_s20 = scalar_lea.vmem %s337_s21, 2048  ;;  %p3658_p6 = scmp.lt.s32.totalorder %s337_s21, %s337_s21 }
  0x59   : > { %p3651_p2 = scmp.ne.s32.totalorder %s337_s21, %s3650_s20  ;;  %p3659_p7 = scmp.lt.s32.totalorder %s3650_s20, %s3650_s20 }
  0x5b   : > { %p3653_p3 = pnand %p3651_p2, %p3935_p1  ;;  %p3660_p9 = por %p3659_p7, %p3658_p6 }
  0x5d   : > { %p3654_p5 = pneg %p3653_p3 }
  0x5f   : > { %p3661_p12 = pnand %p3660_p9, %p3654_p5 }
  0x61   : > { %3664 = shalt.err (!%p3661_p12)
}
  0x62   : > { %s3792_s13 = smov 128   ;;  %s3793_s25 = smov 8  }
  0x63   : > { %3469 = dma.hbm_to_vmem [thread:$0]  (!%p3923_p13), %s4428_s5, 2048, %s337_s21, [#allocation6], %s3792_s13, %s3792_s13, %s3793_s25  }
  0x64   : > { %s3794_s30 = smov [#allocation8]   ;;  %s3665_s24 = scalar_lea.hbm %s4429_s6, 2048 }
  0x65   : > { %s349_s17 = sshll.u32 %s3794_s30, 4  ;;  %p3666_p4 = scmp.ne.s32.totalorder %s4429_s6, %s3665_s24  ;;  %s350_s17 = int_to_ptr.vmem [resolvable:$true] %s349_s17 }
  0x66   : > { %p3672_p11 = scmp.lt.u32.totalorder %s3665_s24, %s4429_s6 }
  0x67   : > { %p3668_p8 = pnand %p3666_p4, %p3935_p1 }
  0x69   : > { %p3669_p10 = pneg %p3668_p8 }
  0x6b   : > { %p3674_p0 = pnand %p3672_p11, %p3669_p10 }
  0x6d   : > { %3677 = shalt.err (!%p3674_p0)
}
  0x6e   : > { %s3678_s21 = scalar_lea.vmem %s350_s17, 2048  ;;  %p3686_p6 = scmp.lt.s32.totalorder %s350_s17, %s350_s17 }
  0x6f   : > { %p3679_p2 = scmp.ne.s32.totalorder %s350_s17, %s3678_s21  ;;  %p3687_p7 = scmp.lt.s32.totalorder %s3678_s21, %s3678_s21 }
  0x71   : > { %p3681_p3 = pnand %p3679_p2, %p3935_p1  ;;  %p3688_p9 = por %p3687_p7, %p3686_p6 }
  0x73   : > { %p3682_p5 = pneg %p3681_p3 }
  0x75   : > { %p3689_p12 = pnand %p3688_p9, %p3682_p5 }
  0x77   : > { %3692 = shalt.err (!%p3689_p12)
}
  0x78   : > { %3472 = dma.hbm_to_vmem [thread:$0]  (!%p3923_p13), %s4429_s6, 2048, %s350_s17, [#allocation9], %s3792_s13, %s3792_s13, %s3793_s25  }
  0x79   : > { %p4460_p4 = scmp.ne.s32.totalorder %s4455_s27, 0 }
  0x7a   : > { %p4461_p8 = scmp.ne.s32.totalorder (!%p4460_p4), %s4456_s28, 0 }
  0x7b   : > { %399 = sbr.rel (%p4460_p4) target bundleno = 3404 (0xd4c), region = 60 }
  0x82   : > { %3746 = dma.done.wait (%p4461_p8), [#allocation3], 6144  }
  0x83   : > { %3748 = vsyncadd (%p4461_p8), [#allocation3], 4294961152 }
  0x84   : > { %3750 = dma.done.wait (%p4461_p8), [#allocation6], 6144  }
  0x85   : > { %3752 = vsyncadd (%p4461_p8), [#allocation6], 4294961152 }
  0x86   : > { %3754 = dma.done.wait (%p4461_p8), [#allocation9], 2048  }
  0x87   : > { %3756 = vsyncadd (%p4461_p8), [#allocation9], 4294965248  ;;  %v3795_v0 = vmov 0.0   ;;  %v3796_v1 = vmov 0.0|0.0   ;;  %vm3797_vm0 = vmmov 0   ;;  %v481_v2 = vld [vmem:[#allocation2 + $0x8] sm:$0xff] }
  0x88   : > { %656 = vmatprep.mubr.f32.mxu0 %v3795_v0  ;;  %3172 = vmatprep.subr.bf16.mxu1 %v3796_v1  ;;  %v484_v3 = vld [vmem:[#allocation2 + $0x20] sm:$0xff]  ;;  %v483_v6 = vld [vmem:[#allocation2 + $0x18] sm:$0xff]  ;;  %v490_v8 = vld [vmem:[#allocation2 + $0x50] sm:$0xff]  ;;  %p460_p13 = scmp.lt.s32.totalorder %s3775_s16, 1  ;;  %vm1276_vm2 = vcmask 64512   ;;  %vm1531_vm3 = vcmask 1042432  }
  0x89   : > { %2894 = vmatprep.mubr.msk.f32.mxu1 %vm3797_vm0, %v3795_v0  ;;  %v480_v4 = vld [vmem:[#allocation2] sm:$0xff]  ;;  %v4023_v5 = vpack.c.bf16 %v484_v3, %v481_v2  ;;  %v487_v7 = vld [vmem:[#allocation2 + $0x38] sm:$0xff]  ;;  %v486_v11 = vld [vmem:[#allocation2 + $0x30] sm:$0xff]  ;;  %vm3799_vm4 = vmmov 1   ;;  %vm1516_vm6 = vcmask 89088   ;;  %vm1676_vm7 = vcmask 82944  }
  0x8a   : > { %v4025_v9 = vpack.c.bf16 %v483_v6, %v480_v4  ;;  %v4027_v10 = vpack.c.bf16 %v490_v8, %v487_v7  ;;  %v489_v12 = vld [vmem:[#allocation2 + $0x48] sm:$0xff]  ;;  %v496_v14 = vld [vmem:[#allocation2 + $0x80] sm:$0xff]  ;;  %v495_v18 = vld [vmem:[#allocation2 + $0x78] sm:$0xff]  ;;  %s4074_s27 = scalar_select %p460_p13, %s3775_s16, 1  ;;  %vm2503_vm8 = vcmask 1047559   ;;  %vm2540_vm9 = vcmask 1041409  }
  0x8b   : > { %v493_v13 = vld [vmem:[#allocation2 + $0x68] sm:$0xff]  ;;  %3141 = vmatprep.subr.bf16.mxu0 %v4023_v5  ;;  %v4031_v15 = vpack.c.bf16 %v489_v12, %v486_v11  ;;  %v492_v17 = vld [vmem:[#allocation2 + $0x60] sm:$0xff]  ;;  %v499_v19 = vld [vmem:[#allocation2 + $0x98] sm:$0xff]  ;;  %s2726_s29 = sshll.u32 %s3775_s16, 5  ;;  %p4464_p10 = scmp.ne.s32.totalorder %s4451_s23, 0 }
  0x8c   : > { %3143 = vmatpush1.bf16.msra.mxu0 %v4025_v9  ;;  %v4034_v16 = vpack.c.bf16 %v496_v14, %v493_v13  ;;  %v502_v20 = vld [vmem:[#allocation2 + $0xb0] sm:$0xff]  ;;  %v4037_v21 = vpack.c.bf16 %v495_v18, %v492_v17  ;;  %v501_v24 = vld [vmem:[#allocation2 + $0xa8] sm:$0xff]  ;;  %v508_v26 = vld [vmem:[#allocation2 + $0xe0] sm:$0xff]  ;;  %s2710_s28 = sshll.u32 %s4074_s27, 3  ;;  %s2713_s25 = sshll.u32 %s4074_s27, 1 }
  0x8d   : > { %3145 = vmatprep.subr.bf16.mxu0 %v4027_v10  ;;  %v4040_v22 = vpack.c.bf16 %v502_v20, %v499_v19  ;;  %v498_v23 = vld [vmem:[#allocation2 + $0x90] sm:$0xff]  ;;  %v505_v25 = vld [vmem:[#allocation2 + $0xc8] sm:$0xff]  ;;  %v488_v31 = vld [vmem:[#allocation2 + $0x40] sm:$0xff]  ;;  %s463_s13 = scalar_lea.vmem %s4423_s0, %s2710_s28  ;;  %s475_s26 = scalar_lea.vmem %s4425_s2, %s2713_s25  ;;  %v1024_v20 = vlaneseq }
  0x8e   : > { %v482_v27 = vld [vmem:[#allocation2 + $0x10] sm:$0xff]  ;;  %v485_v28 = vld [vmem:[#allocation2 + $0x28] sm:$0xff]  ;;  %v4043_v29 = vpack.c.bf16 %v501_v24, %v498_v23  ;;  %v491_v32 = vld [vmem:[#allocation2 + $0x58] sm:$0xff]  ;;  %v4048_v33 = vpack.c.bf16 %v508_v26, %v505_v25  ;;  %s2729_s22 = sshll.u32 %s4074_s27, 4  ;;  %s457_s28 = sand.u32 1, %s3767_s14  }
  0x8f   : > { %v4045_v30 = vpack.c.bf16 %v485_v28, %v482_v27  ;;  %v504_v34 = vld [vmem:[#allocation2 + $0xc0] sm:$0xff]  ;;  %v507_v35 = vld [vmem:[#allocation2 + $0xd8] sm:$0xff]  ;;  %v514_v37 = vld [vmem:[#allocation2 + $0x110] sm:$0xff]  ;;  %v4051_v38 = vpack.c.bf16 %v491_v32, %v488_v31  ;;  %s468_s12 = scalar_lea.vmem %s4424_s1, %s2729_s22  ;;  %v4206_v23 = vshrl.u32 %v1024_v20, 7  ;;  %s2709_s11 = sshll.u32 %s457_s28, 1 }
  0x90   : > { %3147 = vmatpush1.bf16.msra.mxu0 %v4031_v15  ;;  %v511_v36 = vld [vmem:[#allocation2 + $0xf8] sm:$0xff]  ;;  %v494_v39 = vld [vmem:[#allocation2 + $0x70] sm:$0xff]  ;;  %v497_v40 = vld [vmem:[#allocation2 + $0x88] sm:$0xff]  ;;  %v4055_v41 = vpack.c.bf16 %v507_v35, %v504_v34  ;;  %s2546_s22 = scalar_lea.sflag [#allocation4], %s457_s28  ;;  %s3800_s16 = smov [#allocation10]  }
  0x91   : > { %3149 = vmatprep.subr.bf16.mxu0 %v4034_v16  ;;  %3174 = vmatpush3.bf16.msra.mxu1 %v4045_v30  ;;  %v4058_v42 = vpack.c.bf16 %v514_v37, %v511_v36  ;;  %v510_v43 = vld [vmem:[#allocation2 + $0xf0] sm:$0xff]  ;;  %v513_v44 = vld [vmem:[#allocation2 + $0x108] sm:$0xff]  ;;  %v520_v46 = vld [vmem:[#allocation2 + $0x140] sm:$0xff]  ;;  %v4062_v47 = vpack.c.bf16 %v497_v40, %v494_v39  ;;  %v4216_v28 = vsub.s32 0, %v4206_v23  ;;  %vm1026_vm1 = vcmp.lt.s32.totalorder %v4206_v23, 7  ;;  %s3697_s19 = sshll.u32 %s3800_s16, 4  ;;  %s3698_s19 = int_to_ptr.vmem [resolvable:$false] %s3697_s19 }
  0x92   : > { %3175 = vmatprep.subr.bf16.mxu1 %v3796_v1  ;;  %v517_v45 = vld [vmem:[#allocation2 + $0x128] sm:$0xff]  ;;  %v500_v48 = vld [vmem:[#allocation2 + $0xa0] sm:$0xff]  ;;  %v503_v49 = vld [vmem:[#allocation2 + $0xb8] sm:$0xff]  ;;  %v4066_v50 = vpack.c.bf16 %v513_v44, %v510_v43 }
  0x93   : > { %v4069_v51 = vpack.c.bf16 %v520_v46, %v517_v45  ;;  %v516_v52 = vld [vmem:[#allocation2 + $0x120] sm:$0xff]  ;;  %v519_v53 = vld [vmem:[#allocation2 + $0x138] sm:$0xff]  ;;  %v526_v55 = vld [vmem:[#allocation2 + $0x170] sm:$0xff]  ;;  %v4077_v56 = vpack.c.bf16 %v503_v49, %v500_v48 }
  0x94   : > { %3151 = vmatpush1.bf16.msra.mxu0 %v4037_v21  ;;  %v523_v54 = vld [vmem:[#allocation2 + $0x158] sm:$0xff]  ;;  %v506_v57 = vld [vmem:[#allocation2 + $0xd0] sm:$0xff]  ;;  %v509_v58 = vld [vmem:[#allocation2 + $0xe8] sm:$0xff]  ;;  %v4081_v59 = vpack.c.bf16 %v519_v53, %v516_v52 }
  0x95   : > { %3153 = vmatprep.subr.bf16.mxu0 %v4040_v22  ;;  %3177 = vmatpush3.bf16.msra.mxu1 %v4051_v38  ;;  %v4084_v60 = vpack.c.bf16 %v526_v55, %v523_v54  ;;  %v522_v61 = vld [vmem:[#allocation2 + $0x150] sm:$0xff]  ;;  %v525_v62 = vld [vmem:[#allocation2 + $0x168] sm:$0xff]  ;;  %v4088_v63 = vpack.c.bf16 %v509_v58, %v506_v57  ;;  %v512_v2 = vld [vmem:[#allocation2 + $0x100] sm:$0xff] }
  0x96   : > { %3178 = vmatprep.subr.bf16.mxu1 %v3796_v1  ;;  %v515_v3 = vld [vmem:[#allocation2 + $0x118] sm:$0xff]  ;;  %v4092_v4 = vpack.c.bf16 %v525_v62, %v522_v61  ;;  %v518_v7 = vld [vmem:[#allocation2 + $0x130] sm:$0xff]  ;;  %v521_v8 = vld [vmem:[#allocation2 + $0x148] sm:$0xff] }
  0x97   : > { %v4099_v6 = vpack.c.bf16 %v515_v3, %v512_v2  ;;  %v4103_v11 = vld [vmem:[%s463_s13] sm:$0xff]  ;;  %v4107_v12 = vpack.c.bf16 %v521_v8, %v518_v7  ;;  %v527_v14 = vld [vmem:[#allocation2 + $0x178] sm:$0xff]  ;;  %vm4268_vm5 = vmpackc.low %vm1531_vm3, %vm3799_vm4  ;;  %s459_s13 = scalar_lea.vmem [#allocation10], %s2709_s11 }
  0x98   : > { %3155 = vmatpush1.bf16.msra.mxu0 %v4043_v29  ;;  %v524_v13 = vld [vmem:[#allocation2 + $0x160] sm:$0xff]  ;;  %s2560_s25 = sshll.u32 %s459_s13, 4  ;;  %s4377_s25 = int_to_ptr.vmem [resolvable:$true] %s2560_s25 }
  0x99   : > { %3157 = vmatprep.subr.bf16.mxu0 %v4048_v33  ;;  %3180 = vmatpush3.bf16.msra.mxu1 %v4062_v47  ;;  %v4115_v17 = vpack.c.bf16 %v527_v14, %v524_v13  ;;  %v4150_v18 = vld [vmem:[%s475_s26] sm:$0x3]  ;;  %s4375_s26 = scalar_lea.hbm %s4433_s10, %s2726_s29  ;;  %s3693_s24 = scalar_lea.vmem %s4377_s25, 32 }
  0x9a   : > { %3181 = vmatprep.subr.bf16.mxu1 %v3796_v1  ;;  %p3694_p1 = scmp.ne.s32.totalorder %s4377_s25, %s3693_s24  ;;  %p3700_p2 = scmp.lt.s32.totalorder %s4377_s25, %s3698_s19 }
  0x9c   : > { %3159 = vmatpush1.bf16.msra.mxu0 %v4055_v41  ;;  %p3695_p11 = pnand %p3694_p1, %p4464_p10 }
  0x9d   : > { %3161 = vmatprep.subr.bf16.mxu0 %v4058_v42  ;;  %3183 = vmatpush3.bf16.msra.mxu1 %v4077_v56 }
  0x9e   : > { %3184 = vmatprep.subr.bf16.mxu1 %v3796_v1  ;;  %p3696_p0 = pneg %p3695_p11 }
  0xa0   : > { %3163 = vmatpush1.bf16.msra.mxu0 %v4066_v50 }
  0xa1   : > { %3165 = vmatprep.subr.bf16.mxu0 %v4069_v51  ;;  %3186 = vmatpush3.bf16.msra.mxu1 %v4088_v63 }
  0xa2   : > { %3187 = vmatprep.subr.bf16.mxu1 %v3796_v1 }
  0xa4   : > { %3167 = vmatpush1.bf16.msra.mxu0 %v4081_v59 }
  0xa5   : > { %3169 = vmatprep.subr.bf16.mxu0 %v4084_v60  ;;  %3189 = vmatpush3.bf16.msra.mxu1 %v4099_v6 }
  0xa6   : > { %3190 = vmatprep.subr.bf16.mxu1 %v3796_v1 }
  0xa8   : > { %3171 = vmatpush1.bf16.msra.mxu0 %v4092_v4 }
  0xa9   : > { %3197 = vmatprep.subr.bf16.mxu0 %v4023_v5  ;;  %3192 = vmatpush3.bf16.msra.mxu1 %v4107_v12 }
  0xaa   : > { %3193 = vmatprep.subr.bf16.mxu1 %v3796_v1 }
  0xab   : > { %657 = vmatmul.mubr.f32.vlgmr.msra.gmra.mrb[0].mxu0 %v4103_v11 }
  0xac   : > { %3199 = vmatpush1.bf16.msra.mxu0 %v4025_v9  ;;  %797 = vmatprep.mubr.f32.mxu0 %v3795_v0 }
  0xad   : > { %3201 = vmatprep.subr.bf16.mxu0 %v4027_v10  ;;  %3195 = vmatpush3.bf16.msra.mxu1 %v4115_v17 }
  0xae   : > { %3228 = vmatprep.subr.bf16.mxu1 %v3796_v1 }
  0xb0   : > { %3203 = vmatpush1.bf16.msra.mxu0 %v4031_v15  ;;  %2895 = vmatmul.mubr.f32.vlgmr.msra.gmra.mrb[0].mxu1 %v4103_v11 }
  0xb1   : > { %3205 = vmatprep.subr.bf16.mxu0 %v4034_v16  ;;  %3230 = vmatpush3.bf16.msra.mxu1 %v4045_v30 }
  0xb2   : > { %2929 = vmatprep.mubr.msk.f32.mxu1 %vm3797_vm0, %v3795_v0  ;;  %3231 = vmatprep.subr.bf16.mxu1 %v3796_v1 }
  0xb4   : > { %3207 = vmatpush1.bf16.msra.mxu0 %v4037_v21 }
  0xb5   : > { %3209 = vmatprep.subr.bf16.mxu0 %v4040_v22  ;;  %3233 = vmatpush3.bf16.msra.mxu1 %v4051_v38 }
  0xb6   : > { %3234 = vmatprep.subr.bf16.mxu1 %v3796_v1 }
  0xb8   : > { %3211 = vmatpush1.bf16.msra.mxu0 %v4043_v29 }
  0xb9   : > { %3213 = vmatprep.subr.bf16.mxu0 %v4048_v33  ;;  %3236 = vmatpush3.bf16.msra.mxu1 %v4062_v47 }
  0xba   : > { %3237 = vmatprep.subr.bf16.mxu1 %v3796_v1 }
  0xbc   : > { %3215 = vmatpush1.bf16.msra.mxu0 %v4055_v41 }
  0xbd   : > { %3217 = vmatprep.subr.bf16.mxu0 %v4058_v42  ;;  %3239 = vmatpush3.bf16.msra.mxu1 %v4077_v56 }
  0xbe   : > { %3240 = vmatprep.subr.bf16.mxu1 %v3796_v1 }
  0xc0   : > { %3219 = vmatpush1.bf16.msra.mxu0 %v4066_v50 }
  0xc1   : > { %3221 = vmatprep.subr.bf16.mxu0 %v4069_v51  ;;  %3242 = vmatpush3.bf16.msra.mxu1 %v4088_v63 }
  0xc2   : > { %3243 = vmatprep.subr.bf16.mxu1 %v3796_v1 }
  0xc4   : > { %3223 = vmatpush1.bf16.msra.mxu0 %v4081_v59 }
  0xc5   : > { %3225 = vmatprep.subr.bf16.mxu0 %v4084_v60  ;;  %3245 = vmatpush3.bf16.msra.mxu1 %v4099_v6 }
  0xc6   : > { %3246 = vmatprep.subr.bf16.mxu1 %v3796_v1 }
  0xc8   : > { %3227 = vmatpush1.bf16.msra.mxu0 %v4092_v4 }
  0xc9   : > { %3253 = vmatprep.subr.bf16.mxu0 %v4023_v5  ;;  %3248 = vmatpush3.bf16.msra.mxu1 %v4107_v12  ;;  %v477_v5 = vld [vmem:[%s468_s12] sm:$0xff] }
  0xca   : > { %3249 = vmatprep.subr.bf16.mxu1 %v3796_v1 }
  0xcb   : > { %798 = vmatmul.mubr.f32.vlgmr.msra.gmra.mrb[2].mxu0 %v4150_v18 }
  0xcc   : > { %3255 = vmatpush1.bf16.msra.mxu0 %v4025_v9  ;;  %938 = vmatprep.mubr.f32.mxu0 %v3795_v0  ;;  %v478_v9 = vld [vmem:[%s468_s12 + $0x8] sm:$0x7]  ;;  %s3699_s12 = scalar_lea.vmem %s3698_s19, 64 }
  0xcd   : > { %3257 = vmatprep.subr.bf16.mxu0 %v4027_v10  ;;  %3251 = vmatpush3.bf16.msra.mxu1 %v4115_v17  ;;  %p3701_p3 = scmp.lt.s32.totalorder %s3699_s12, %s3693_s24 }
  0xce   : > { %3285 = vmatprep.subr.bf16.mxu1 %v4045_v30 }
  0xcf   : > { %p3702_p5 = por %p3701_p3, %p3700_p2 }
  0xd0   : > { %3259 = vmatpush1.bf16.msra.mxu0 %v4031_v15  ;;  %2930 = vmatmul.mubr.f32.vlgmr.msra.gmra.mrb[2].mxu1 %v4150_v18 }
  0xd1   : > { %3261 = vmatprep.subr.bf16.mxu0 %v4034_v16  ;;  %3287 = vmatpush3.bf16.msra.mxu1 %v4045_v30  ;;  %p3703_p6 = pnand %p3702_p5, %p3696_p0 }
  0xd2   : > { %3289 = vmatprep.subr.bf16.mxu1 %v4051_v38  ;;  %2964 = vmatprep.mubr.f32.mxu1 %v477_v5 }
  0xd4   : > { %3263 = vmatpush1.bf16.msra.mxu0 %v4037_v21  ;;  %v3798_v21 = vmov 1966171168  }
  0xd5   : > { %3265 = vmatprep.subr.bf16.mxu0 %v4040_v22  ;;  %3291 = vmatpush3.bf16.msra.mxu1 %v4051_v38  ;;  %v1029_v22 = vunpack.c.l.s4 %v3798_v21  ;;  %v574_v21 = vld [vmem:[#allocation7 + $0x70] sm:$0xff] }
  0xd6   : > { %3293 = vmatprep.subr.bf16.mxu1 %v4062_v47 }
  0xd7   : > { %v1030_v24 = vunpack.c.0.s8 %v1029_v22 }
  0xd8   : > { %3267 = vmatpush1.bf16.msra.mxu0 %v4043_v29 }
  0xd9   : > { %3269 = vmatprep.subr.bf16.mxu0 %v4048_v33  ;;  %3295 = vmatpush3.bf16.msra.mxu1 %v4062_v47  ;;  %v4209_v25 = vsub.s32 %v1030_v24, %v4206_v23 }
  0xda   : > { %3297 = vmatprep.subr.bf16.mxu1 %v4077_v56 }
  0xdc   : > { %3271 = vmatpush1.bf16.msra.mxu0 %v4055_v41 }
  0xdd   : > { %3273 = vmatprep.subr.bf16.mxu0 %v4058_v42  ;;  %3299 = vmatpush3.bf16.msra.mxu1 %v4077_v56 }
  0xde   : > { %3301 = vmatprep.subr.bf16.mxu1 %v4088_v63 }
  0xe0   : > { %3275 = vmatpush1.bf16.msra.mxu0 %v4066_v50 }
  0xe1   : > { %3277 = vmatprep.subr.bf16.mxu0 %v4069_v51  ;;  %3303 = vmatpush3.bf16.msra.mxu1 %v4088_v63 }
  0xe2   : > { %3305 = vmatprep.subr.bf16.mxu1 %v4099_v6 }
  0xe4   : > { %3279 = vmatpush1.bf16.msra.mxu0 %v4081_v59 }
  0xe5   : > { %3281 = vmatprep.subr.bf16.mxu0 %v4084_v60  ;;  %3307 = vmatpush3.bf16.msra.mxu1 %v4099_v6 }
  0xe6   : > { %3309 = vmatprep.subr.bf16.mxu1 %v4107_v12 }
  0xe8   : > { %3283 = vmatpush1.bf16.msra.mxu0 %v4092_v4 }
  0xe9   : > { %2972 = vmatprep.subr.mxu0 %v3795_v0  ;;  %3311 = vmatpush3.bf16.msra.mxu1 %v4107_v12 }
  0xea   : > { %3313 = vmatprep.subr.bf16.mxu1 %v4115_v17 }
  0xeb   : > { %939 = vmatmul.mubr.f32.vlgmr.msra.gmra.mrb[4].mxu0 %v477_v5 }
  0xec   : > { %943 = vmatprep.mubr.f32.mxu0 %v3795_v0 }
  0xed   : > { %3315 = vmatpush3.bf16.msra.mxu1 %v4115_v17 }
  0xee   : > { %2967 = vmatprep.subr.mxu1 %v3795_v0 }
  0xef   : > { %944 = vmatmul.mubr.f32.gmra.mrb[6].mxu0 %v478_v9 }
  0xf0   : > { %2965 = vmatmul.mubr.f32.vlgmr.msra.gmra.mrb[4].mxu1 %v478_v9  ;;  %2974 = vmatprep.mubr.msk.f32.mxu0 %vm3797_vm0, %v3795_v0 }
  0xf1   : > { %2969 = vmatprep.mubr.msk.f32.mxu1 %vm3797_vm0, %v3795_v0 }
 0x17e   : > { %v4203_v10 = vpop.f32.mrb[0].mxu0 }
 0x17f   : > { %v660_v15 = vpop.f32.mrb[1].mxu0 }
 0x183   : > { %v729_v16 = vpop.f32.mrb[0].mxu1 }
 0x184   : > { %v2896_v19 = vpop.f32.mrb[1].mxu1 }
 0x19e   : > { %v4211_v26 = vpop.f32.mrb[2].mxu0 }
 0x19f   : > { %v1034_v27 = vrot.slane %v4211_v26, %v4209_v25  ;;  %v801_v29 = vpop.f32.mrb[3].mxu0 }
 0x1a0   : > { %v1071_v30 = vrot.slane %v801_v29, %v4209_v25 }
 0x1a1   : > { %v1035_v31 = vcombine.high %v1034_v27, %v1034_v27  ;;  %v1042_v32 = vrot.slane %v1034_v27, %v4209_v25 }
 0x1a2   : > { %v1072_v33 = vcombine.high %v1071_v30, %v1071_v30  ;;  %v1079_v34 = vrot.slane %v1071_v30, %v4209_v25 }
 0x1a3   : > { %v1049_v35 = vrot.slane %v1035_v31, %v4209_v25  ;;  %v1055_v36 = vrot.slane %v1042_v32, %v4216_v28  ;;  %v870_v45 = vpop.f32.mrb[2].mxu1 }
 0x1a4   : > { %v1086_v37 = vrot.slane %v1072_v33, %v4209_v25  ;;  %v1090_v38 = vrot.slane %v1079_v34, %v4216_v28  ;;  %v1106_v46 = vrot.slane %v870_v45, %v4209_v25  ;;  %v2931_v47 = vpop.f32.mrb[3].mxu1 }
 0x1a5   : > { %v1059_v39 = vrot.slane %v1049_v35, %v4216_v28  ;;  %v1062_v40 = vsel %vm1026_vm1, %v4203_v10, %v1055_v36 }
 0x1a6   : > { %v1094_v41 = vrot.slane %v1086_v37, %v4216_v28  ;;  %v1097_v42 = vsel %vm1026_vm1, %v660_v15, %v1090_v38  ;;  %v1107_v48 = vcombine.high %v1106_v46, %v1106_v46  ;;  %v1114_v49 = vrot.slane %v1106_v46, %v4209_v25 }
 0x1a7   : > { %2968 = vmatpush3.xpose.msra.mxu1 %v1097_v42  ;;  %v1063_v43 = vsel %vm1026_vm1, %v4203_v10, %v1059_v39 }
 0x1a8   : > { %v1098_v44 = vsel %vm1026_vm1, %v660_v15, %v1094_v41  ;;  %2977 = vmatprep.subr.mxu1 %v3795_v0  ;;  %v1121_v50 = vrot.slane %v1107_v48, %v4209_v25  ;;  %v1125_v51 = vrot.slane %v1114_v49, %v4216_v28 }
 0x1a9   : > { %2973 = vmatpush3.xpose.msra.mxu0 %v1098_v44 }
 0x1aa   : > { %2970 = vmatmul.mubr.f32.vlgmr.msra.gmra.mrb[6].mxu1 %v1062_v40  ;;  %2982 = vmatprep.subr.mxu0 %v3795_v0  ;;  %v1129_v52 = vrot.slane %v1121_v50, %v4216_v28  ;;  %v1132_v53 = vsel %vm1026_vm1, %v729_v16, %v1125_v51 }
 0x1ab   : > { %2979 = vmatprep.mubr.msk.f32.mxu1 %vm3797_vm0, %v3795_v0  ;;  %2978 = vmatpush3.msra.mxu1 %v1132_v53 }
 0x1ac   : > { %2975 = vmatmul.mubr.f32.vlgmr.msra.gmra.mrb[8].mxu0 %v1063_v43  ;;  %v1133_v54 = vsel %vm1026_vm1, %v729_v16, %v1129_v52  ;;  %3316 = vmatprep.subr.bf16.mxu1 %v3796_v1 }
 0x1ad   : > { %2984 = vmatprep.mubr.msk.f32.mxu0 %vm3797_vm0, %v3795_v0  ;;  %2983 = vmatpush3.msra.mxu0 %v1133_v54  ;;  %v560_v54 = vld [vmem:[#allocation7] sm:$0xff] }
 0x1ae   : > { %3319 = vmatprep.subr.bf16.mxu0 %v3796_v1 }
 0x1be   : > { %v940_v55 = vpop.f32.mrb[4].mxu0 }
 0x1bf   : > { %v941_v57 = vpop.f32.mrb[5].mxu0  ;;  %v561_v55 = vld [vmem:[#allocation7 + $0x8] sm:$0xff] }
 0x1c2   : > { %v945_v60 = vpop.f32.mrb[6].mxu0 }
 0x1c3   : > { %v2966_v56 = vpop.f32.mrb[4].mxu1  ;;  %v946_v61 = vpop.f32.mrb[7].mxu0  ;;  %v563_v60 = vld [vmem:[#allocation7 + $0x18] sm:$0xff] }
 0x1c4   : > { %v1015_v58 = vpop.f32.mrb[5].mxu1  ;;  %v3317_v62 = vpack.c.bf16 %v946_v61, %v941_v57 }
 0x1c5   : > { %v4255_v59 = vpack.c.bf16 %v2966_v56, %v1015_v58  ;;  %v3331_v58 = vpack.c.bf16 %v561_v55, %v560_v54  ;;  %v545_v54 = vld [vmem:[#allocation5 + $0x88] sm:$0xff]  ;;  %v547_v55 = vld [vmem:[#allocation5 + $0x98] sm:$0xff] }
 0x27d   : > { %v1200_v63 = vpop.f32.mrb[6].mxu1 }
 0x27e   : > { %v1274_v2 = vmul.f32 0.088388346, %v1200_v63  ;;  %v2971_v3 = vpop.f32.mrb[7].mxu1  ;;  %v565_v63 = vld [vmem:[#allocation7 + $0x28] sm:$0xff] }
 0x27f   : > { %v1270_v4 = vpop.f32.mrb[8].mxu0 }
 0x280   : > { %v1275_v6 = vmul.f32 0.088388346, %v1270_v4  ;;  %v2976_v7 = vpop.f32.mrb[9].mxu0  ;;  %v1277_v8 = vsel %vm1276_vm2, %v1274_v2, -inf }
 0x281   : > { %1278 = vmax.xlane.f32.xlu0 %v1277_v8  ;;  %v567_v7 = vld [vmem:[#allocation7 + $0x38] sm:$0xff] }
 0x282   : > { %v1280_v12 = vsel %vm1276_vm2, %v1275_v6, -inf }
 0x283   : > { %1281 = vmax.xlane.f32.xlu1 %v1280_v12  ;;  %v568_v12 = vld [vmem:[#allocation7 + $0x40] sm:$0xff] }
 0x30e   : > { %v1279_v13 = vpop.xlane.xlu0 %1278 }
 0x30f   : > { %v1283_v14 = vsub.f32 %v1274_v2, %v1279_v13  ;;  %v569_v13 = vld [vmem:[#allocation7 + $0x48] sm:$0xff] }
 0x311   : > { %v1285_v17 = vmul.f32 1.442695, %v1283_v14  ;;  %v3343_v14 = vpack.c.bf16 %v569_v13, %v568_v12  ;;  %v552_v13 = vld [vmem:[#allocation5 + $0xc0] sm:$0xff] }
 0x313   : > { %3549 = vpow2.f32 %v1285_v17  ;;  %v570_v17 = vld [vmem:[#allocation7 + $0x50] sm:$0xff] }
 0x31d   : > { %v3550_v5 = vpop.eup %3549 }
 0x31e   : > { %v1289_v9 = vsel %vm1276_vm2, %v3550_v5, 0.0 }
 0x31f   : > { %1290 = vadd.xlane.f32.xlu0 %v1289_v9 }
 0x3ac   : > { %v1291_v15 = vpop.xlane.xlu0 %1290 }
 0x3ad   : > { %3551 = vrcp.f32 %v1291_v15  ;;  %v572_v15 = vld [vmem:[#allocation7 + $0x60] sm:$0xff] }
 0x3b7   : > { %v3552_v16 = vpop.eup %3551 }
 0x3b8   : > { %v1297_v19 = vmul.f32 %v3552_v16, %v3550_v5  ;;  %v571_v5 = vld [vmem:[#allocation7 + $0x58] sm:$0xff]  ;;  %v573_v16 = vld [vmem:[#allocation7 + $0x68] sm:$0xff] }
 0x3b9   : > { %v3346_v9 = vpack.c.bf16 %v571_v5, %v570_v17  ;;  %v557_v17 = vld [vmem:[#allocation5 + $0xe8] sm:$0xff]  ;;  %v559_v5 = vld [vmem:[#allocation5 + $0xf8] sm:$0xff] }
 0x3ba   : > { %2980 = vmatmul.mubr.msk.f32.vlgmr.msra.gmra.mrb[8].mxu1 %vm1276_vm2, %v1297_v19  ;;  %v3349_v19 = vpack.c.bf16 %v573_v16, %v572_v15  ;;  %v3406_v15 = vpack.c.bf16 %v559_v5, %v557_v17  ;;  %v556_v16 = vld [vmem:[#allocation5 + $0xe0] sm:$0xff]  ;;  %v583_v17 = vld [vmem:[#allocation8 + $0x38] sm:$0xff] }
 0x3bb   : > { %3318 = vmatpush3.bf16.xpose.msra.mxu1 %v3317_v62  ;;  %2991 = vmatprep.mubr.msk.f32.mxu1 %vm3797_vm0, %v3795_v0 }
 0x3bc   : > { %3323 = vmatprep.subr.bf16.mxu1 %v3796_v1 }
 0x3c2   : > { %2992 = vmatmul.mubr.f32.vlgmr.msra.gmra.mrb[10].mxu1 %v4203_v10  ;;  %v1282_v10 = vpop.xlane.xlu1 %1281 }
 0x3c3   : > { %3325 = vmatpush3.bf16.xpose.msra.mxu1 %v3317_v62  ;;  %3005 = vmatprep.mubr.msk.f32.mxu1 %vm3797_vm0, %v3795_v0  ;;  %v1284_v22 = vsub.f32 %v1275_v6, %v1282_v10  ;;  %v564_v62 = vld [vmem:[#allocation7 + $0x20] sm:$0xff]  ;;  %v566_v6 = vld [vmem:[#allocation7 + $0x30] sm:$0xff]  ;;  %v575_v10 = vld [vmem:[#allocation7 + $0x78] sm:$0xff] }
 0x3c4   : > { %3326 = vmatprep.subr.bf16.mxu1 %v3796_v1  ;;  %v3337_v4 = vpack.c.bf16 %v565_v63, %v564_v62  ;;  %v3340_v8 = vpack.c.bf16 %v567_v7, %v566_v6  ;;  %v551_v62 = vld [vmem:[#allocation5 + $0xb8] sm:$0xff]  ;;  %v553_v6 = vld [vmem:[#allocation5 + $0xc8] sm:$0xff] }
 0x3c5   : > { %v1287_v24 = vmul.f32 1.442695, %v1284_v22  ;;  %v3352_v22 = vpack.c.bf16 %v575_v10, %v574_v21  ;;  %v555_v7 = vld [vmem:[#allocation5 + $0xd8] sm:$0xff] }
 0x3c6   : > { %v3402_v12 = vpack.c.bf16 %v555_v7, %v553_v6 }
 0x3c7   : > { %3553 = vpow2.f32 %v1287_v24 }
 0x3ca   : > { %3006 = vmatmul.mubr.f32.vlgmr.msra.gmra.mrb[12].mxu1 %v4211_v26 }
 0x3cb   : > { %3329 = vmatpush3.bf16.msk.msra.mxu1 %vm4268_vm5, %v4255_v59  ;;  %3012 = vmatprep.mubr.msk.f32.mxu1 %vm3797_vm0, %v3795_v0 }
 0x3cc   : > { %3330 = vmatprep.subr.bf16.mxu1 %v3796_v1 }
 0x3d1   : > { %v3554_v33 = vpop.eup %3553 }
 0x3d2   : > { %v1292_v34 = vsel %vm1276_vm2, %v3554_v33, 0.0 }
 0x48d   : > { %v4279_v27 = vpop.f32.mrb[8].mxu1 }
 0x48e   : > { %v2981_v29 = vpop.f32.mrb[9].mxu1 }
 0x495   : > { %v1511_v30 = vpop.f32.mrb[10].mxu1 }
 0x496   : > { %v1515_v31 = vmul.f32 0.088388346, %v1511_v30  ;;  %v2993_v26 = vpop.f32.mrb[11].mxu1  ;;  %v529_v30 = vld [vmem:[#allocation5 + $0x8] sm:$0xff] }
 0x498   : > { %v1517_v32 = vsel %vm1516_vm6, %v1515_v31, -inf }
 0x499   : > { %1518 = vmax.xlane.f32.xlu1 %v1517_v32  ;;  %v528_v32 = vld [vmem:[#allocation5] sm:$0xff] }
 0x49d   : > { %v1671_v35 = vpop.f32.mrb[12].mxu1  ;;  %1293 = vadd.xlane.f32.xlu1 %v1292_v34  ;;  %v533_v34 = vld [vmem:[#allocation5 + $0x28] sm:$0xff] }
 0x49e   : > { %v1675_v36 = vmul.f32 0.088388346, %v1671_v35  ;;  %v3007_v37 = vpop.f32.mrb[13].mxu1  ;;  %v535_v35 = vld [vmem:[#allocation5 + $0x38] sm:$0xff] }
 0x49f   : > { %v3382_v37 = vpack.c.bf16 %v535_v35, %v533_v34 }
 0x4a0   : > { %v1677_v38 = vsel %vm1676_vm7, %v1675_v36, -inf }
 0x4a1   : > { %1678 = vmax.xlane.f32.xlu0 %v1677_v38  ;;  %v532_v38 = vld [vmem:[#allocation5 + $0x20] sm:$0xff] }
 0x526   : > { %v1519_v39 = vpop.xlane.xlu1 %1518 }
 0x527   : > { %v1520_v40 = vsub.f32 %v1515_v31, %v1519_v39  ;;  %v531_v31 = vld [vmem:[#allocation5 + $0x18] sm:$0xff]  ;;  %v534_v39 = vld [vmem:[#allocation5 + $0x30] sm:$0xff] }
 0x528   : > { %v3378_v26 = vpack.c.bf16 %v531_v31, %v529_v30 }
 0x529   : > { %v1521_v41 = vmul.f32 1.442695, %v1520_v40 }
 0x52a   : > { %v1294_v42 = vpop.xlane.xlu1 %1293 }
 0x52b   : > { %3555 = vpow2.f32 %v1521_v41  ;;  %v537_v41 = vld [vmem:[#allocation5 + $0x48] sm:$0xff] }
 0x52c   : > { %3557 = vrcp.f32 %v1294_v42  ;;  %v539_v42 = vld [vmem:[#allocation5 + $0x58] sm:$0xff] }
 0x52e   : > { %v1679_v43 = vpop.xlane.xlu0 %1678 }
 0x52f   : > { %v1680_v44 = vsub.f32 %v1675_v36, %v1679_v43  ;;  %v3384_v43 = vpack.c.bf16 %v534_v39, %v532_v38 }
 0x531   : > { %v1681_v45 = vmul.f32 1.442695, %v1680_v44  ;;  %v3386_v44 = vpack.c.bf16 %v539_v42, %v537_v41 }
 0x533   : > { %3559 = vpow2.f32 %v1681_v45  ;;  %v536_v45 = vld [vmem:[#allocation5 + $0x40] sm:$0xff] }
 0x535   : > { %v3556_v46 = vpop.eup %3555 }
 0x536   : > { %v3558_v47 = vpop.eup %3557  ;;  %v1523_v48 = vsel %vm1516_vm6, %v3556_v46, 0.0 }
 0x537   : > { %v1298_v49 = vmul.f32 %v3558_v47, %v3554_v33  ;;  %1524 = vadd.xlane.f32.xlu0 %v1523_v48  ;;  %v530_v33 = vld [vmem:[#allocation5 + $0x10] sm:$0xff]  ;;  %v541_v47 = vld [vmem:[#allocation5 + $0x68] sm:$0xff]  ;;  %v543_v48 = vld [vmem:[#allocation5 + $0x78] sm:$0xff] }
 0x538   : > { %v3380_v36 = vpack.c.bf16 %v530_v33, %v528_v32 }
 0x539   : > { %2985 = vmatmul.mubr.msk.f32.vlgmr.msra.gmra.mrb[10].mxu0 %vm1276_vm2, %v1298_v49 }
 0x53a   : > { %3322 = vmatpush3.bf16.msk.msra.mxu0 %vm4268_vm5, %v4255_v59  ;;  %2998 = vmatprep.mubr.msk.f32.mxu0 %vm3797_vm0, %v3795_v0  ;;  %v562_v59 = vld [vmem:[#allocation7 + $0x10] sm:$0xff] }
 0x53b   : > { %3354 = vmatprep.subr.bf16.mxu0 %v3796_v1  ;;  %v3334_v61 = vpack.c.bf16 %v563_v60, %v562_v59  ;;  %v544_v59 = vld [vmem:[#allocation5 + $0x80] sm:$0xff]  ;;  %v546_v60 = vld [vmem:[#allocation5 + $0x90] sm:$0xff] }
 0x53c   : > { %v3396_v63 = vpack.c.bf16 %v546_v60, %v544_v59  ;;  %v576_v59 = vld [vmem:[#allocation8] sm:$0xff]  ;;  %v577_v60 = vld [vmem:[#allocation8 + $0x8] sm:$0xff] }
 0x53d   : > { %v3560_v50 = vpop.eup %3559 }
 0x53e   : > { %v1683_v51 = vsel %vm1676_vm7, %v3560_v50, 0.0 }
 0x53f   : > { %1684 = vadd.xlane.f32.xlu1 %v1683_v51  ;;  %v540_v51 = vld [vmem:[#allocation5 + $0x60] sm:$0xff] }
 0x5c4   : > { %v1525_v52 = vpop.xlane.xlu0 %1524 }
 0x5c5   : > { %3561 = vrcp.f32 %v1525_v52  ;;  %v542_v52 = vld [vmem:[#allocation5 + $0x70] sm:$0xff] }
 0x5cc   : > { %v1685_v53 = vpop.xlane.xlu1 %1684 }
 0x5cd   : > { %3563 = vrcp.f32 %v1685_v53 }
 0x5cf   : > { %v3562_v56 = vpop.eup %3561 }
 0x5d0   : > { %v1527_v57 = vmul.f32 %v3562_v56, %v3556_v46  ;;  %v538_v46 = vld [vmem:[#allocation5 + $0x50] sm:$0xff] }
 0x5d1   : > { %v3388_v49 = vpack.c.bf16 %v538_v46, %v536_v45 }
 0x5d2   : > { %2999 = vmatmul.mubr.msk.f32.vlgmr.msra.gmra.mrb[12].mxu0 %vm1516_vm6, %v1527_v57  ;;  %v3392_v57 = vpack.c.bf16 %v542_v52, %v540_v51 }
 0x5d3   : > { %3356 = vmatpush3.bf16.msra.mxu0 %v3331_v58  ;;  %3082 = vmatprep.mubr.msk.f32.mxu0 %vm3797_vm0, %v3795_v0 }
 0x5d4   : > { %3357 = vmatprep.subr.bf16.mxu0 %v3796_v1 }
 0x5d7   : > { %v3564_v2 = vpop.eup %3563  ;;  %3359 = vmatpush3.bf16.msra.mxu0 %v3334_v61 }
 0x5d8   : > { %v1687_v3 = vmul.f32 %v3564_v2, %v3560_v50  ;;  %3360 = vmatprep.subr.bf16.mxu0 %v3796_v1  ;;  %v3390_v50 = vpack.c.bf16 %v543_v48, %v541_v47 }
 0x5da   : > { %3013 = vmatmul.mubr.msk.f32.vlgmr.msra.gmra.mrb[14].mxu1 %vm1516_vm6, %v1687_v3  ;;  %v548_v3 = vld [vmem:[#allocation5 + $0xa0] sm:$0xff] }
 0x5db   : > { %3332 = vmatpush3.bf16.msra.mxu1 %v3331_v58  ;;  %3362 = vmatpush3.bf16.msra.mxu0 %v3337_v4  ;;  %v3394_v58 = vpack.c.bf16 %v547_v55, %v545_v54 }
 0x5dc   : > { %3333 = vmatprep.subr.bf16.mxu1 %v3796_v1  ;;  %3363 = vmatprep.subr.bf16.mxu0 %v3796_v1 }
 0x5dd   : > { %3047 = vmatprep.mubr.msk.f32.mxu1 %vm3797_vm0, %v3795_v0 }
 0x5df   : > { %3335 = vmatpush3.bf16.msra.mxu1 %v3334_v61  ;;  %3365 = vmatpush3.bf16.msra.mxu0 %v3340_v8  ;;  %v549_v61 = vld [vmem:[#allocation5 + $0xa8] sm:$0xff] }
 0x5e0   : > { %3336 = vmatprep.subr.bf16.mxu1 %v3796_v1  ;;  %3366 = vmatprep.subr.bf16.mxu0 %v3796_v1  ;;  %v3398_v2 = vpack.c.bf16 %v551_v62, %v549_v61 }
 0x5e3   : > { %3338 = vmatpush3.bf16.msra.mxu1 %v3337_v4  ;;  %3368 = vmatpush3.bf16.msra.mxu0 %v3343_v14  ;;  %v550_v4 = vld [vmem:[#allocation5 + $0xb0] sm:$0xff] }
 0x5e4   : > { %3339 = vmatprep.subr.bf16.mxu1 %v3796_v1  ;;  %3369 = vmatprep.subr.bf16.mxu0 %v3796_v1 }
 0x5e7   : > { %3341 = vmatpush3.bf16.msra.mxu1 %v3340_v8  ;;  %3371 = vmatpush3.bf16.msra.mxu0 %v3346_v9  ;;  %v3400_v8 = vpack.c.bf16 %v550_v4, %v548_v3  ;;  %v579_v3 = vld [vmem:[#allocation8 + $0x18] sm:$0xff] }
 0x5e8   : > { %3342 = vmatprep.subr.bf16.mxu1 %v3796_v1  ;;  %3372 = vmatprep.subr.bf16.mxu0 %v3796_v1 }
 0x5eb   : > { %3344 = vmatpush3.bf16.msra.mxu1 %v3343_v14  ;;  %3374 = vmatpush3.bf16.msra.mxu0 %v3349_v19  ;;  %v554_v14 = vld [vmem:[#allocation5 + $0xd0] sm:$0xff] }
 0x5ec   : > { %3345 = vmatprep.subr.bf16.mxu1 %v3796_v1  ;;  %3375 = vmatprep.subr.bf16.mxu0 %v3796_v1 }
 0x5ef   : > { %3347 = vmatpush3.bf16.msra.mxu1 %v3346_v9  ;;  %3377 = vmatpush3.bf16.msra.mxu0 %v3352_v22  ;;  %v3404_v9 = vpack.c.bf16 %v554_v14, %v552_v13  ;;  %v582_v14 = vld [vmem:[#allocation8 + $0x30] sm:$0xff] }
 0x5f0   : > { %3348 = vmatprep.subr.bf16.mxu1 %v3796_v1  ;;  %3085 = vmatprep.subr.mxu0 %v3795_v0  ;;  %v3422_v5 = vpack.c.bf16 %v583_v17, %v582_v14 }
 0x5f3   : > { %3350 = vmatpush3.bf16.msra.mxu1 %v3349_v19  ;;  %v558_v19 = vld [vmem:[#allocation5 + $0xf0] sm:$0xff] }
 0x5f4   : > { %3351 = vmatprep.subr.bf16.mxu1 %v3796_v1  ;;  %v3408_v21 = vpack.c.bf16 %v558_v19, %v556_v16  ;;  %v586_v16 = vld [vmem:[#allocation8 + $0x50] sm:$0xff]  ;;  %v587_v19 = vld [vmem:[#allocation8 + $0x58] sm:$0xff] }
 0x5f7   : > { %3353 = vmatpush3.bf16.msra.mxu1 %v3352_v22 }
 0x5f8   : > { %3379 = vmatprep.subr.bf16.mxu1 %v3378_v26 }
 0x60c   : > { %v4314_v24 = vpop.f32.mrb[10].mxu0 }
 0x60d   : > { %v2986_v29 = vpop.f32.mrb[11].mxu0 }
 0x6a5   : > { %v1601_v40 = vpop.f32.mrb[12].mxu0 }
 0x6a6   : > { %v3000_v1 = vpop.f32.mrb[13].mxu0  ;;  %3048 = vmatmul.mubr.f32.vlgmr.msra.gmra.mrb[16].mxu1 %v1601_v40 }
 0x6a7   : > { %3381 = vmatpush1.bf16.msra.mxu1 %v3380_v36  ;;  %2000 = vmatprep.mubr.f32.mxu1 %v3795_v0 }
 0x6a8   : > { %3383 = vmatprep.subr.bf16.mxu1 %v3382_v37 }
 0x6ab   : > { %3385 = vmatpush1.bf16.msra.mxu1 %v3384_v43 }
 0x6ac   : > { %3387 = vmatprep.subr.bf16.mxu1 %v3386_v44 }
 0x6ad   : > { %v1757_v53 = vpop.f32.mrb[14].mxu1 }
 0x6ae   : > { %v3014_v56 = vpop.f32.mrb[15].mxu1  ;;  %3083 = vmatmul.mubr.f32.vlgmr.msra.gmra.mrb[14].mxu0 %v1757_v53 }
 0x6af   : > { %3389 = vmatpush1.bf16.msra.mxu1 %v3388_v49  ;;  %3087 = vmatprep.mubr.msk.f32.mxu0 %vm3797_vm0, %v3795_v0 }
 0x6b0   : > { %3391 = vmatprep.subr.bf16.mxu1 %v3390_v50 }
 0x6b3   : > { %3393 = vmatpush1.bf16.msra.mxu1 %v3392_v57 }
 0x6b4   : > { %3395 = vmatprep.subr.bf16.mxu1 %v3394_v58 }
 0x6b7   : > { %3397 = vmatpush1.bf16.msra.mxu1 %v3396_v63  ;;  %v3410_v63 = vpack.c.bf16 %v577_v60, %v576_v59  ;;  %v2723_v59 = vld [vmem:[%s4431_s8] ss:$0 sm:$0xff] }
 0x6b8   : > { %3399 = vmatprep.subr.bf16.mxu1 %v3398_v2  ;;  %v578_v2 = vld [vmem:[#allocation8 + $0x10] sm:$0xff] }
 0x6b9   : > { %v3414_v7 = vpack.c.bf16 %v579_v3, %v578_v2 }
 0x6bb   : > { %3401 = vmatpush1.bf16.msra.mxu1 %v3400_v8  ;;  %v580_v8 = vld [vmem:[#allocation8 + $0x20] sm:$0xff] }
 0x6bc   : > { %3403 = vmatprep.subr.bf16.mxu1 %v3402_v12  ;;  %v581_v12 = vld [vmem:[#allocation8 + $0x28] sm:$0xff] }
 0x6bd   : > { %v3418_v13 = vpack.c.bf16 %v581_v12, %v580_v8  ;;  %v2485_v12 = vsub.s32 7, %v4206_v23 }
 0x6bf   : > { %3405 = vmatpush1.bf16.msra.mxu1 %v3404_v9  ;;  %v584_v9 = vld [vmem:[#allocation8 + $0x40] sm:$0xff] }
 0x6c0   : > { %3407 = vmatprep.subr.bf16.mxu1 %v3406_v15  ;;  %v585_v15 = vld [vmem:[#allocation8 + $0x48] sm:$0xff] }
 0x6c3   : > { %3409 = vmatpush1.bf16.msra.mxu1 %v3408_v21  ;;  %v3430_v21 = vpack.c.bf16 %v587_v19, %v586_v16 }
 0x6c6   : > { %2001 = vmatmul.mubr.f32.vlgmr.msra.gmra.mrb[18].mxu1 %v4279_v27 }
 0x6c7   : > { %2006 = vmatprep.mubr.f32.mxu1 %v3795_v0 }
 0x6ca   : > { %2007 = vmatmul.mubr.f32.gmra.mrb[20].mxu1 %v4314_v24 }
 0x779   : > { %v1827_v10 = vpop.f32.mrb[16].mxu1 }
 0x77a   : > { %v3049_v22 = vpop.f32.mrb[17].mxu1 }
 0x77b   : > { %v589_v22 = vld [vmem:[#allocation8 + $0x68] sm:$0xff] }
 0x781   : > { %v1897_v29 = vpop.f32.mrb[14].mxu0 }
 0x782   : > { %v1908_v30 = vrot.slane %v1897_v29, %v4209_v25  ;;  %v3084_v31 = vpop.f32.mrb[15].mxu0 }
 0x783   : > { %v591_v31 = vld [vmem:[#allocation8 + $0x78] sm:$0xff] }
 0x784   : > { %v1909_v26 = vcombine.high %v1908_v30, %v1908_v30  ;;  %v1916_v32 = vrot.slane %v1908_v30, %v4209_v25  ;;  %v590_v30 = vld [vmem:[#allocation8 + $0x70] sm:$0xff] }
 0x786   : > { %v1923_v33 = vrot.slane %v1909_v26, %v4209_v25  ;;  %v1927_v34 = vrot.slane %v1916_v32, %v4216_v28  ;;  %v3438_v26 = vpack.c.bf16 %v591_v31, %v590_v30 }
 0x788   : > { %v1931_v35 = vrot.slane %v1923_v33, %v4216_v28  ;;  %v1934_v27 = vsel %vm1026_vm1, %v1827_v10, %v1927_v34 }
 0x789   : > { %3086 = vmatpush3.xpose.msra.mxu0 %v1934_v27  ;;  %v2330_v27 = vrot.slane %v4150_v18, %v4209_v25 }
 0x78a   : > { %3090 = vmatprep.subr.mxu0 %v3795_v0  ;;  %v1935_v24 = vsel %vm1026_vm1, %v1827_v10, %v1931_v35  ;;  %v588_v10 = vld [vmem:[#allocation8 + $0x60] sm:$0xff] }
 0x78b   : > { %v3434_v29 = vpack.c.bf16 %v589_v22, %v588_v10 }
 0x799   : > { %v2002_v36 = vpop.f32.mrb[18].mxu1 }
 0x79a   : > { %v2004_v37 = vpop.f32.mrb[19].mxu1  ;;  %3088 = vmatmul.mubr.f32.vlgmr.msra.gmra.mrb[16].mxu0 %v2002_v36 }
 0x79b   : > { %3091 = vmatpush3.xpose.msra.mxu0 %v1935_v24  ;;  %3092 = vmatprep.mubr.msk.f32.mxu0 %vm3797_vm0, %v3795_v0  ;;  %v2331_v24 = vcombine.high %v2330_v27, %v2330_v27 }
 0x79c   : > { %3095 = vmatprep.subr.mxu0 %v3795_v0 }
 0x79d   : > { %v2008_v38 = vpop.f32.mrb[20].mxu1  ;;  %v2345_v36 = vrot.slane %v2331_v24, %v4209_v25 }
 0x79e   : > { %v2010_v39 = vpop.f32.mrb[21].mxu1  ;;  %3093 = vmatmul.mubr.f32.vlgmr.msra.gmra.mrb[18].mxu0 %v2008_v38 }
 0x79f   : > { %3096 = vmatpush3.msra.mxu0 %v2004_v37  ;;  %3097 = vmatprep.mubr.msk.f32.mxu0 %vm3797_vm0, %v3795_v0  ;;  %v2338_v37 = vrot.slane %v2330_v27, %v4209_v25  ;;  %v2353_v38 = vrot.slane %v2345_v36, %v4216_v28 }
 0x7a0   : > { %3100 = vmatprep.subr.mxu0 %v3795_v0 }
 0x86d   : > { %v2079_v40 = vpop.f32.mrb[16].mxu0 }
 0x86e   : > { %v2153_v41 = vmul.f32 0.088388346, %v2079_v40  ;;  %v3089_v42 = vpop.f32.mrb[17].mxu0  ;;  %v2722_v40 = vld [vmem:[%s4430_s7] ss:$0 sm:$0xff] }
 0x86f   : > { %v2357_v42 = vsel %vm1026_vm1, %v4103_v11, %v2353_v38 }
 0x870   : > { %v2155_v1 = vsel %vm1276_vm2, %v2153_v41, -inf }
 0x871   : > { %2156 = vmax.xlane.f32.xlu0 %v2155_v1  ;;  %v2149_v43 = vpop.f32.mrb[18].mxu0 }
 0x872   : > { %v2154_v44 = vmul.f32 0.088388346, %v2149_v43  ;;  %v3094_v45 = vpop.f32.mrb[19].mxu0 }
 0x874   : > { %v2158_v46 = vsel %vm1276_vm2, %v2154_v44, -inf }
 0x875   : > { %2159 = vmax.xlane.f32.xlu1 %v2158_v46 }
 0x8fe   : > { %v2157_v47 = vpop.xlane.xlu0 %2156 }
 0x8ff   : > { %v2161_v48 = vsub.f32 %v2153_v41, %v2157_v47 }
 0x901   : > { %v2163_v49 = vmul.f32 1.442695, %v2161_v48 }
 0x902   : > { %v2160_v50 = vpop.xlane.xlu1 %2159 }
 0x903   : > { %3565 = vpow2.f32 %v2163_v49  ;;  %v2162_v51 = vsub.f32 %v2154_v44, %v2160_v50 }
 0x905   : > { %v2165_v52 = vmul.f32 1.442695, %v2162_v51 }
 0x907   : > { %3567 = vpow2.f32 %v2165_v52 }
 0x90d   : > { %v3566_v53 = vpop.eup %3565 }
 0x90e   : > { %v2167_v54 = vsel %vm1276_vm2, %v3566_v53, 0.0 }
 0x90f   : > { %2168 = vadd.xlane.f32.xlu0 %v2167_v54 }
 0x911   : > { %v3568_v55 = vpop.eup %3567 }
 0x912   : > { %v2170_v56 = vsel %vm1276_vm2, %v3568_v55, 0.0 }
 0x913   : > { %2171 = vadd.xlane.f32.xlu1 %v2170_v56 }
 0x99c   : > { %v2169_v57 = vpop.xlane.xlu0 %2168 }
 0x99d   : > { %3569 = vrcp.f32 %v2169_v57 }
 0x9a0   : > { %v2172_v58 = vpop.xlane.xlu1 %2171 }
 0x9a1   : > { %3571 = vrcp.f32 %v2172_v58 }
 0x9a7   : > { %v3570_v61 = vpop.eup %3569 }
 0x9a8   : > { %v2175_v62 = vmul.f32 %v3570_v61, %v3566_v53 }
 0x9aa   : > { %3098 = vmatmul.mubr.msk.f32.vlgmr.msra.gmra.mrb[20].mxu0 %vm1276_vm2, %v2175_v62  ;;  %v2724_v62 = vld [vmem:[%s4432_s9] ss:$0 sm:$0xff] }
 0x9ab   : > { %v3572_v4 = vpop.eup %3571  ;;  %3101 = vmatpush3.msra.mxu0 %v2010_v39  ;;  %3102 = vmatprep.mubr.msk.f32.mxu0 %vm3797_vm0, %v3795_v0  ;;  %v3426_v0 = vpack.c.bf16 %v585_v15, %v584_v9  ;;  %v2349_v39 = vrot.slane %v2338_v37, %v4216_v28 }
 0x9ac   : > { %v2176_v6 = vmul.f32 %v3572_v4, %v3568_v55  ;;  %3411 = vmatprep.subr.bf16.mxu0 %v3410_v63 }
 0x9ad   : > { %v2356_v43 = vsel %vm1026_vm1, %v4103_v11, %v2349_v39 }
 0x9ae   : > { %3103 = vmatmul.mubr.msk.f32.vlgmr.msra.gmra.mrb[22].mxu0 %vm1276_vm2, %v2176_v6 }
 0x9af   : > { %3413 = vmatpush3.bf16.msra.mxu0 %v3410_v63 }
 0x9b0   : > { %3415 = vmatprep.subr.bf16.mxu0 %v3414_v7 }
 0x9b3   : > { %3417 = vmatpush3.bf16.msra.mxu0 %v3414_v7 }
 0x9b4   : > { %3419 = vmatprep.subr.bf16.mxu0 %v3418_v13 }
 0x9b7   : > { %3421 = vmatpush3.bf16.msra.mxu0 %v3418_v13 }
 0x9b8   : > { %3423 = vmatprep.subr.bf16.mxu0 %v3422_v5 }
 0x9bb   : > { %3425 = vmatpush3.bf16.msra.mxu0 %v3422_v5 }
 0x9bc   : > { %3427 = vmatprep.subr.bf16.mxu0 %v3426_v0 }
 0x9bf   : > { %3429 = vmatpush3.bf16.msra.mxu0 %v3426_v0 }
 0x9c0   : > { %3431 = vmatprep.subr.bf16.mxu0 %v3430_v21 }
 0x9c3   : > { %3433 = vmatpush3.bf16.msra.mxu0 %v3430_v21 }
 0x9c4   : > { %3435 = vmatprep.subr.bf16.mxu0 %v3434_v29 }
 0x9c7   : > { %3437 = vmatpush3.bf16.msra.mxu0 %v3434_v29 }
 0x9c8   : > { %3439 = vmatprep.subr.bf16.mxu0 %v3438_v26 }
 0x9cb   : > { %3441 = vmatpush3.bf16.msra.mxu0 %v3438_v26 }
 0xa7d   : > { %v2246_v32 = vpop.f32.mrb[20].mxu0 }
 0xa7e   : > { %v3099_v33 = vpop.f32.mrb[21].mxu0  ;;  %3137 = vmatprep.mubr.f32.mxu0 %v2246_v32  ;;  %v2531_v32 = vand.u32 127, %v1024_v20 }
 0xa80   : > { %v2534_v27 = vsub.s32 %v2531_v32, %v4206_v23 }
 0xa81   : > { %v2319_v34 = vpop.f32.mrb[22].mxu0 }
 0xa82   : > { %v3104_v35 = vpop.f32.mrb[23].mxu0  ;;  %3138 = vmatmul.mubr.f32.vlgmr.msra.gmra.mrb[24].mxu0 %v2319_v34 }
 0xb55   : > { %v3139_v41 = vpop.f32.mrb[24].mxu0 }
 0xb56   : > { %v2437_v1 = vadd.f32 %v3139_v41, %v2722_v40  ;;  %v2431_v18 = vpop.f32.mrb[25].mxu0 }
 0xb57   : > { %v2432_v25 = vadd.f32 %v2722_v40, %v2431_v18 }
 0xb58   : > { %v2441_v44 = vadd.f32 %v2437_v1, %v2357_v42 }
 0xb59   : > { %v2440_v45 = vadd.f32 %v2432_v25, %v2356_v43 }
 0xb5a   : > { %2444 = vadd.xlane.f32.xlu1 %v2441_v44 }
 0xb5b   : > { %2442 = vadd.xlane.f32.xlu0 %v2440_v45 }
 0xbe7   : > { %v2445_v28 = vpop.xlane.xlu1 %2444 }
 0xbe8   : > { %v2448_v46 = vmul.f32 0.0078125, %v2445_v28  ;;  %v2443_v47 = vpop.xlane.xlu0 %2442 }
 0xbe9   : > { %v2447_v48 = vmul.f32 0.0078125, %v2443_v47 }
 0xbea   : > { %v2450_v49 = vsub.f32 %v2441_v44, %v2448_v46 }
 0xbeb   : > { %v2449_v50 = vsub.f32 %v2440_v45, %v2447_v48 }
 0xbec   : > { %v2452_v51 = vmul.f32 %v2450_v49, %v2450_v49 }
 0xbed   : > { %v2451_v52 = vmul.f32 %v2449_v50, %v2449_v50 }
 0xbee   : > { %2455 = vadd.xlane.f32.xlu1 %v2452_v51 }
 0xbef   : > { %2453 = vadd.xlane.f32.xlu0 %v2451_v52 }
 0xc7b   : > { %v2456_v53 = vpop.xlane.xlu1 %2455 }
 0xc7c   : > { %v2458_v54 = vmul.f32 0.0078125, %v2456_v53  ;;  %v2454_v55 = vpop.xlane.xlu0 %2453 }
 0xc7d   : > { %v2457_v56 = vmul.f32 0.0078125, %v2454_v55 }
 0xc7e   : > { %v2460_v11 = vadd.f32 1e-05, %v2458_v54 }
 0xc7f   : > { %v2459_v57 = vadd.f32 1e-05, %v2457_v56 }
 0xc80   : > { %3573 = vrsqrt.f32 %v2460_v11 }
 0xc81   : > { %3575 = vrsqrt.f32 %v2459_v57 }
 0xc8a   : > { %v3574_v58 = vpop.eup %3573 }
 0xc8b   : > { %v3576_v60 = vpop.eup %3575  ;;  %v2464_v61 = vmul.f32 %v3574_v58, %v2450_v49 }
 0xc8c   : > { %v2463_v63 = vmul.f32 %v3576_v60, %v2449_v50 }
 0xc8d   : > { %v2473_v2 = vmul.f32 %v2723_v59, %v2464_v61 }
 0xc8e   : > { %v2472_v3 = vmul.f32 %v2723_v59, %v2463_v63 }
 0xc8f   : > { %v2482_v4 = vadd.f32 %v2724_v62, %v2473_v2 }
 0xc90   : > { %v2481_v6 = vadd.f32 %v2724_v62, %v2472_v3 }
 0xc91   : > { %v2498_v7 = vmul.f32 %v2482_v4, %v2482_v4  ;;  %v2490_v17 = vrot.slane %v2482_v4, %v2485_v12 }
 0xc92   : > { %v2497_v8 = vmul.f32 %v2481_v6, %v2481_v6  ;;  %v2486_v5 = vrot.slane %v2481_v6, %v2485_v12 }
 0xc93   : > { %v2507_v13 = vsel %vm2503_vm8, %v2498_v7, 0.0  ;;  %v2492_v9 = vmul.f32 %v2490_v17, %v2482_v4 }
 0xc94   : > { %2508 = vadd.xlane.f32.xlu1 %v2507_v13  ;;  %v2504_v14 = vsel %vm2503_vm8, %v2497_v8, 0.0  ;;  %v2491_v15 = vmul.f32 %v2486_v5, %v2481_v6 }
 0xc95   : > { %2505 = vadd.xlane.f32.xlu0 %v2504_v14 }
 0xc98   : > { %2501 = vadd.xlane.f32.xlu1 %v2498_v7 }
 0xc99   : > { %2499 = vadd.xlane.f32.xlu0 %v2497_v8 }
 0xc9c   : > { %2495 = vadd.xlane.f32.xlu1 %v2492_v9 }
 0xc9d   : > { %2493 = vadd.xlane.f32.xlu0 %v2491_v15 }
 0xd21   : > { %v2509_v0 = vpop.xlane.xlu1 %2508 }
 0xd22   : > { %v2506_v16 = vpop.xlane.xlu0 %2505  ;;  %v2517_v19 = vrot.slane %v2509_v0, %v2485_v12 }
 0xd23   : > { %v2513_v21 = vrot.slane %v2506_v16, %v2485_v12 }
 0xd25   : > { %v2502_v10 = vpop.xlane.xlu1 %2501 }
 0xd26   : > { %v2519_v22 = vmul.f32 %v2517_v19, %v2502_v10  ;;  %v2500_v29 = vpop.xlane.xlu0 %2499 }
 0xd27   : > { %v2518_v30 = vmul.f32 %v2513_v21, %v2500_v29 }
 0xd28   : > { %v2521_v31 = vmax.f32 %v2519_v22, 1e-16 }
 0xd29   : > { %v2520_v26 = vmax.f32 %v2518_v30, 1e-16  ;;  %v2496_v34 = vpop.xlane.xlu1 %2495 }
 0xd2a   : > { %3577 = vrsqrt.f32 %v2521_v31  ;;  %v2494_v36 = vpop.xlane.xlu0 %2493 }
 0xd2b   : > { %3579 = vrsqrt.f32 %v2520_v26 }
 0xd34   : > { %v3578_v33 = vpop.eup %3577 }
 0xd35   : > { %v3580_v35 = vpop.eup %3579  ;;  %v2525_v24 = vmul.f32 %v3578_v33, %v2496_v34 }
 0xd36   : > { %v2524_v37 = vmul.f32 %v3580_v35, %v2494_v36 }
 0xd37   : > { %v2527_v38 = vmul.f32 16.0, %v2525_v24 }
 0xd38   : > { %v2526_v39 = vmul.f32 16.0, %v2524_v37 }
 0xd39   : > { %v2539_v40 = vrot.slane %v2527_v38, %v2534_v27 }
 0xd3a   : > { %v2535_v41 = vrot.slane %v2526_v39, %v2534_v27 }
 0xd3c   : > { %v2541_v42 = vsel %vm2540_vm9, %v2539_v40, %v2535_v41 }
 0xd3d   : > { %v2543_v20 = vsel %vm1276_vm2, %v2541_v42, 0.0 }
 0xd3e   : > { %2544 = vst [vmem:[%s459_s13] sm:$0x3] %v2543_v20 }
 0xd3f   : > { %3706 = shalt.err (!%p3703_p6)
}
 0xd40   : > { %s3707_s15 = scalar_lea.hbm %s4375_s26, 32  ;;  %s3711_s4 = scalar_lea.hbm %s4433_s10, 64 }
 0xd41   : > { %p3708_p7 = scmp.ne.s32.totalorder %s4375_s26, %s3707_s15  ;;  %p3712_p4 = scmp.lt.u32.totalorder %s4375_s26, %s4433_s10 }
 0xd42   : > { %p3713_p8 = scmp.lt.u32.totalorder %s3711_s4, %s3707_s15  ;;  %p3715_p1 = scmp.lt.u32.totalorder %s3707_s15, %s4375_s26 }
 0xd43   : > { %p3709_p9 = pnand %p3708_p7, %p4464_p10 }
 0xd44   : > { %p3714_p13 = por %p3713_p8, %p3712_p4 }
 0xd45   : > { %p3710_p12 = pneg %p3709_p9 }
 0xd46   : > { %p3716_p11 = por %p3715_p1, %p3714_p13 }
 0xd48   : > { %p3717_p0 = pnand %p3716_p11, %p3710_p12 }
 0xd4a   : > { %3720 = shalt.err (!%p3717_p0)
}
 0xd4b   : > { %3458 = dma.vmem_to_hbm [thread:$0]  (%p4464_p10), %s4377_s25, 32, %s4375_s26, %s2546_s22  }
 0xd4c PF: > { %s4465_s28 = sld [smem:[#allocation18_spill]]  ;;  %s4466_s11 = sld [smem:[#allocation15_spill]] }
 0xd4d   : > { %s4467_s29 = sld [smem:[#allocation20_spill]] }
 0xd52   : > { %p3485_p2 = scmp.ge.s32.totalorder %s4465_s28, 2  ;;  %s2572_s13 = sand.u32 1, %s4466_s11  }
 0xd53   : > { %p4468_p3 = scmp.ne.s32.totalorder %s4467_s29, 0  ;;  %s2573_s30 = scalar_lea.sflag [#allocation4], %s2572_s13 }
 0xd55   : > { %p3474_p5 = pnand %p3485_p2, %p4468_p3 }
 0xd57   : > { %3758 = dma.done.wait (!%p3474_p5), %s2573_s30, 32  }
 0xd58   : > { %3760 = vsyncadd (!%p3474_p5), %s2573_s30, 4294967264  ;;  %s26_s18 = sadd.s32 1, %s4465_s28   ;;  %s4469_s17 = sld [smem:[#allocation16_spill]] }
 0xd59   : > { %p23_p6 = scmp.ge.s32.totalorder %s26_s18, 4   ;;  %s4470_s15 = sld [smem:[#allocation21_spill]] }
 0xd5a   : > { %s4471_s16 = sld [smem:[#allocation17_spill]]  ;;  %s4472_s23 = sld [smem:[#allocation19_spill]] }
 0xd5b   : > { %s4473_s13 = smov %s3767_s14  ;;  %25 = sbr.rel (!%p23_p6) target bundleno = 9 (0x9), region = 118 }
 0xd5e   : > { %s4474_s14 = smov %s4469_s17 }
 0xd60   : > { %s4475_s17 = smov %s4472_s23 }
 0xd62   :  { %2578 = vsyncpa [#allocation3], 1 }
 0xd63   :  { %2580 = vsyncpa [#allocation3 + $0x1], 1 }
 0xd64   :  { %2581 = vsyncpa [#allocation6], 1 }
 0xd65   :  { %2582 = vsyncpa [#allocation9], 1 }
 0xd66   :  { %2583 = vsyncpa [#allocation4], 1 }
 0xd67   :  { %2585 = vsyncpa [#allocation4 + $0x1], 1 }

</bundles_post_ra>
